<compile_context>
chip_gen: v6e
topology: v6e:2x2x1
jax: 0.10.0
libtpu: 0.0.40
codegen_flags: <defaults>
</compile_context>

<pallas_src>
import functools

import jax
import jax.numpy as jnp
from jax import lax
from jax.experimental import pallas as pl
from jax.experimental.pallas import tpu as pltpu


# -------------------- helpers --------------------

def _round_up(x, m):
    return (x + m - 1) // m * m


def _pad_gate_cols(w, n, n_pad):
    """Pad each of the 4 LSTM gate blocks along the last axis from n to n_pad."""
    parts = [w[..., k * n:(k + 1) * n] for k in range(4)]
    pad_cfg = [(0, 0)] * (w.ndim - 1) + [(0, n_pad - n)]
    return jnp.concatenate([jnp.pad(p, pad_cfg) for p in parts], axis=-1)


def _pick_t_tile(T, bB, bytes_per_step, budget=2 * 1024 * 1024):
    """Largest divisor of T whose per-tile streamed/scratch buffers stay small."""
    best = 1
    for d in range(1, T + 1):
        if T % d == 0 and d * bB * bytes_per_step <= budget:
            best = d
    return best


def _pick_row_tile(Bp, T, cap=1024):
    """Largest tm = Bp*d (d | T) with tm <= cap (so tm | T*Bp, tm % 8 == 0)."""
    best = Bp
    for d in range(1, T + 1):
        if T % d == 0 and Bp * d <= cap:
            best = max(best, Bp * d)
    return best


def _pick_col_tile(Vp, cap=1024):
    """Largest multiple of 128 dividing Vp, <= cap (lane-dense vocab tiles)."""
    best = 128
    for tn in range(128, min(Vp, cap) + 1, 128):
        if Vp % tn == 0:
            best = tn
    return best


def _pick_unroll(tT, bB, n):
    """Keep unroll * live-vregs-per-step comfortably inside the 64-vreg file."""
    vregs_per_step = max(1, (bB // 8) * (6 * n) // 128)   # pre + h + c
    return max(1, min(tT, 8, 48 // vregs_per_step))


def _lstm_gates(pre, c, n):
    """PyTorch-ordered (i,f,g,o) LSTM cell update from pre-activations."""
    # sigmoid(x) = 0.5*tanh(0.5*x) + 0.5 : one EUP push per gate (vs exp+div),
    # and exact at 0 so zero-padded lanes stay exactly 0 through the recurrence.
    def sig(v):
        return 0.5 * jnp.tanh(0.5 * v) + 0.5
    i = sig(pre[:, 0 * n:1 * n])
    f = sig(pre[:, 1 * n:2 * n])
    g = jnp.tanh(pre[:, 2 * n:3 * n])
    o = sig(pre[:, 3 * n:4 * n])
    c_new = f * c + i * g
    h_new = o * jnp.tanh(c_new)
    return h_new, c_new


# -------------------- Pallas kernel 1a: encoder recurrence --------------------

def encoder_kernel(x_ref,        # (tT, bB, Ep)  f32   embedded inputs (streamed)
                   wih_ref,      # (Ep, 4Hp)     bf16
                   whh_ref,      # (Hp, 4Hp)     bf16
                   b_ref,        # (1, 4Hp)      f32
                   henc_ref,     # (bB, Hp)      f32   final hidden (revisited)
                   xg_scr,       # (tT*bB, 4Hp)  f32   scratch: tile input gates
                   h_scr, c_scr,  # (bB, Hp)     f32   scratch: carried state
                   *, unroll):
    tT, bB, Ep = x_ref.shape
    Hp = whh_ref.shape[0]
    t_idx = pl.program_id(1)

    @pl.when(t_idx == 0)
    def _():
        h_scr[...] = jnp.zeros_like(h_scr)
        c_scr[...] = jnp.zeros_like(c_scr)

    # Tile-wide input projection (one MXU matmul, off the serial chain):
    # (tT*bB, Ep) @ (Ep, 4Hp) + b  -> stored to scratch, sliced per step below.
    x2d = x_ref[...].reshape(tT * bB, Ep).astype(jnp.bfloat16)
    xg_scr[...] = (jnp.dot(x2d, wih_ref[...],
                           preferred_element_type=jnp.float32) + b_ref[...])

    whh = whh_ref[...]

    # TODO(synk): if the bundle shows the per-step W_hh push dominating at tiny
    # batch, hold W_hh in MXU staging via pltpu.matmul_push_rhs/matmul_acc_lhs.
    def step(t, carry):
        h, c = carry
        row = pl.multiple_of(t * bB, bB)
        pre = (xg_scr[pl.ds(row, bB), :]
               + jnp.dot(h.astype(jnp.bfloat16), whh,
                         preferred_element_type=jnp.float32))
        return _lstm_gates(pre, c, Hp)

    h, c = lax.fori_loop(0, tT, step, (h_scr[...], c_scr[...]), unroll=unroll)
    h_scr[...] = h
    c_scr[...] = c
    henc_ref[...] = h          # same block across t -> last tile's value persists


# -------------------- Pallas kernel 1b: decoder recurrence --------------------

def decoder_kernel(henc_ref,     # (bB, Hp)      f32   encoder final hidden
                   wih_ref,      # (Hp, 4Ep)     bf16
                   whh_ref,      # (Ep, 4Ep)     bf16
                   b_ref,        # (1, 4Ep)      f32
                   hdec_ref,     # (tT, bB, Ep)  bf16  decoder hiddens (streamed)
                   gates_scr,    # (bB, 4Ep)     f32   scratch: invariant gates
                   h_scr, c_scr,  # (bB, Ep)     f32   scratch: carried state
                   hbuf_scr,     # (tT, bB, Ep)  f32   scratch: per-tile hiddens
                   *, unroll):
    tT = hdec_ref.shape[0]
    Ep = whh_ref.shape[0]
    t_idx = pl.program_id(1)

    @pl.when(t_idx == 0)
    def _():
        h_scr[...] = jnp.zeros_like(h_scr)
        c_scr[...] = jnp.zeros_like(c_scr)
        # Decoder input is h_enc at every step -> its gate projection is
        # loop-invariant; compute once per batch block, keep in scratch.
        gates_scr[...] = (jnp.dot(henc_ref[...].astype(jnp.bfloat16),
                                  wih_ref[...],
                                  preferred_element_type=jnp.float32)
                          + b_ref[...])

    in_gates = gates_scr[...]
    whh = whh_ref[...]

    def step(t, carry):
        h, c = carry
        pre = in_gates + jnp.dot(h.astype(jnp.bfloat16), whh,
                                 preferred_element_type=jnp.float32)
        h_new, c_new = _lstm_gates(pre, c, Ep)
        hbuf_scr[t] = h_new
        return h_new, c_new

    h, c = lax.fori_loop(0, tT, step, (h_scr[...], c_scr[...]), unroll=unroll)
    h_scr[...] = h
    c_scr[...] = c
    # one bulk lane-dense bf16 store of the whole tile (no per-step bf16 stores)
    hdec_ref[...] = hbuf_scr[...].astype(hdec_ref.dtype)


# -------------------- Pallas kernel 2: output projection --------------------

def output_proj_kernel(h_ref, wo_ref, bo_ref, out_ref):
    # (tm, Ep) bf16 @ (Ep, tn) bf16 -> (tm, tn) f32, bias folded in
    out_ref[...] = (jnp.dot(h_ref[...], wo_ref[...],
                            preferred_element_type=jnp.float32)
                    + bo_ref[...])


# -------------------- wrapper --------------------

def lstm_autoencoder_forward(x_tokens, params):
    """x_tokens: int32 [B, T]. Returns float32 logits [B, T, vocab_size+1]."""
    B, T = x_tokens.shape
    E = params["wih_e"].shape[0]        # emb_dim
    H = params["whh_e"].shape[0]        # hidden_dim
    V = params["wo"].shape[1]           # vocab_size + 1

    Bp = _round_up(max(B, 8), 8)        # sublane-aligned batch
    Hp = _round_up(H, 128)              # lane-aligned encoder gate width
    Ep = _round_up(E, 128)              # lane-aligned emb / decoder / proj width
    Vp = _round_up(V, 128)              # lane-dense vocab width
    f32, bf16 = jnp.float32, jnp.bfloat16

    # megacore batch split (v7x has 2 TCs): 2 batch blocks when Bp allows.
    nb = 2 if (Bp >= 16 and Bp % 16 == 0) else 1
    bB = Bp // nb

    # T tile: bound the largest per-tile f32 buffer (gate scratch / hbuf);
    # this is also what keeps the kernel inside the 64 MiB v7x VMEM.
    tT = _pick_t_tile(T, bB, 4 * max(Hp, Ep) * 4)
    nT = T // tT
    unroll_e = _pick_unroll(tT, bB, Hp)
    unroll_d = _pick_unroll(tT, bB, Ep)

    # ---- pad weights (zero pads keep padded h/c lanes exactly 0), cast bf16 ----
    wih_e_p = jnp.pad(_pad_gate_cols(params["wih_e"].astype(f32), H, Hp),
                      ((0, Ep - E), (0, 0))).astype(bf16)            # (Ep, 4Hp)
    whh_e_p = jnp.pad(_pad_gate_cols(params["whh_e"].astype(f32), H, Hp),
                      ((0, Hp - H), (0, 0))).astype(bf16)            # (Hp, 4Hp)
    b_e_p = _pad_gate_cols(params["b_e"].astype(f32), H, Hp)         # (1, 4Hp)
    wih_d_p = jnp.pad(_pad_gate_cols(params["wih_d"].astype(f32), E, Ep),
                      ((0, Hp - H), (0, 0))).astype(bf16)            # (Hp, 4Ep)
    whh_d_p = jnp.pad(_pad_gate_cols(params["whh_d"].astype(f32), E, Ep),
                      ((0, Ep - E), (0, 0))).astype(bf16)            # (Ep, 4Ep)
    b_d_p = _pad_gate_cols(params["b_d"].astype(f32), E, Ep)         # (1, 4Ep)
    wo_p = jnp.pad(params["wo"].astype(f32),
                   ((0, Ep - E), (0, Vp - V))).astype(bf16)          # (Ep, Vp)
    bo_p = jnp.pad(params["bo"].astype(f32), ((0, 0), (0, Vp - V)))  # (1, Vp)

    # ---- embedding gather, already time-major (no big-activation transpose) ----
    emb_p = jnp.pad(params["embedding"].astype(f32), ((0, 0), (0, Ep - E)))
    x_emb = jnp.take(emb_p, x_tokens.T, axis=0)                      # (T, B, Ep)
    x_emb = jnp.pad(x_emb, ((0, 0), (0, Bp - B), (0, 0)))            # (T, Bp, Ep)

    def cparams(sem):
        # explicit scoped-VMEM limit: safe on v5e/v6e (128 MiB) and v7x (64 MiB);
        # tiles above are sized to stay well below it with double-buffering.
        return pltpu.CompilerParams(dimension_semantics=sem,
                                    vmem_limit_bytes=32 * 1024 * 1024)

    # ---- kernel 1a: encoder recurrence (streams x tiles, outputs final h) ----
    h_enc = pl.pallas_call(
        functools.partial(encoder_kernel, unroll=unroll_e),
        out_shape=jax.ShapeDtypeStruct((Bp, Hp), f32),
        grid_spec=pltpu.PrefetchScalarGridSpec(
            num_scalar_prefetch=0, grid=(nb, nT),
            in_specs=[pl.BlockSpec((tT, bB, Ep), lambda b, t: (t, b, 0)),
                      pl.BlockSpec((Ep, 4 * Hp), lambda b, t: (0, 0)),
                      pl.BlockSpec((Hp, 4 * Hp), lambda b, t: (0, 0)),
                      pl.BlockSpec((1, 4 * Hp), lambda b, t: (0, 0))],
            out_specs=pl.BlockSpec((bB, Hp), lambda b, t: (b, 0)),
            scratch_shapes=[pltpu.VMEM((tT * bB, 4 * Hp), f32),
                            pltpu.VMEM((bB, Hp), f32),
                            pltpu.VMEM((bB, Hp), f32)]),
        compiler_params=cparams(("parallel", "arbitrary")),
    )(x_emb, wih_e_p, whh_e_p, b_e_p)

    # ---- kernel 1b: decoder recurrence (streams bf16 h_dec tiles out) ----
    h_dec = pl.pallas_call(
        functools.partial(decoder_kernel, unroll=unroll_d),
        out_shape=jax.ShapeDtypeStruct((T, Bp, Ep), bf16),
        grid_spec=pltpu.PrefetchScalarGridSpec(
            num_scalar_prefetch=0, grid=(nb, nT),
            in_specs=[pl.BlockSpec((bB, Hp), lambda b, t: (b, 0)),
                      pl.BlockSpec((Hp, 4 * Ep), lambda b, t: (0, 0)),
                      pl.BlockSpec((Ep, 4 * Ep), lambda b, t: (0, 0)),
                      pl.BlockSpec((1, 4 * Ep), lambda b, t: (0, 0))],
            out_specs=pl.BlockSpec((tT, bB, Ep), lambda b, t: (t, b, 0)),
            scratch_shapes=[pltpu.VMEM((bB, 4 * Ep), f32),
                            pltpu.VMEM((bB, Ep), f32),
                            pltpu.VMEM((bB, Ep), f32),
                            pltpu.VMEM((tT, bB, Ep), f32)]),
        compiler_params=cparams(("parallel", "arbitrary")),
    )(h_enc, wih_d_p, whh_d_p, b_d_p)

    # ---- kernel 2: output projection, 2-D (rows x vocab) parallel grid ----
    M = T * Bp
    tm = _pick_row_tile(Bp, T)
    tn = _pick_col_tile(Vp)
    h2d = h_dec.reshape(M, Ep)
    logits2d = pl.pallas_call(
        output_proj_kernel,
        out_shape=jax.ShapeDtypeStruct((M, Vp), f32),
        grid_spec=pltpu.PrefetchScalarGridSpec(
            num_scalar_prefetch=0, grid=(M // tm, Vp // tn),
            in_specs=[pl.BlockSpec((tm, Ep), lambda i, j: (i, 0)),
                      pl.BlockSpec((Ep, tn), lambda i, j: (0, j)),
                      pl.BlockSpec((1, tn), lambda i, j: (0, j))],
            out_specs=pl.BlockSpec((tm, tn), lambda i, j: (i, j))),
        compiler_params=cparams(("parallel", "parallel")),
    )(h2d, wo_p, bo_p)

    logits = logits2d.reshape(T, Bp, Vp)[:, :B, :V]   # strip batch/vocab pads
    return jnp.transpose(logits, (1, 0, 2))           # (B, T, V)


# -------------------- pure-JAX reference (for verification) --------------------

def _lstm_ref(inputs, wih, whh, b, out_dim):
    B = inputs.shape[0]
    h0 = jnp.zeros((B, out_dim), jnp.float32)
    c0 = jnp.zeros((B, out_dim), jnp.float32)
    hi = lax.Precision.HIGHEST

    def step(carry, x_t):
        h, c = carry
        gates = (jnp.dot(x_t, wih, precision=hi)
                 + jnp.dot(h, whh, precision=hi) + b)
        i = jax.nn.sigmoid(gates[:, 0 * out_dim:1 * out_dim])
        f = jax.nn.sigmoid(gates[:, 1 * out_dim:2 * out_dim])
        g = jnp.tanh(gates[:, 2 * out_dim:3 * out_dim])
        o = jax.nn.sigmoid(gates[:, 3 * out_dim:4 * out_dim])
        c = f * c + i * g
        h = o * jnp.tanh(c)
        return (h, c), h

    (h, _), hs = lax.scan(step, (h0, c0), jnp.transpose(inputs, (1, 0, 2)))
    return jnp.transpose(hs, (1, 0, 2)), h


def reference_forward(x_tokens, params):
    H = params["whh_e"].shape[0]
    E = params["whh_d"].shape[0]
    T = x_tokens.shape[1]
    x = jnp.take(params["embedding"], x_tokens, axis=0)
    _, h_enc = _lstm_ref(x, params["wih_e"], params["whh_e"], params["b_e"], H)
    dec_in = jnp.repeat(h_enc[:, None, :], T, axis=1)
    dec_out, _ = _lstm_ref(dec_in, params["wih_d"], params["whh_d"],
                           params["b_d"], E)
    return (jnp.dot(dec_out, params["wo"], precision=lax.Precision.HIGHEST)
            + params["bo"])


# -------------------- parameter init --------------------

def init_params(key, vocab_size, emb_dim, hidden_dim):
    V = vocab_size + 1
    ks = jax.random.split(key, 9)
    s = 0.1
    emb = jax.random.normal(ks[0], (V, emb_dim), jnp.float32) * s
    emb = emb.at[0].set(0.0)  # padding_idx=0
    return {
        "embedding": emb,
        # encoder LSTM (emb_dim -> hidden_dim), gate order i,f,g,o
        "wih_e": jax.random.normal(ks[1], (emb_dim, 4 * hidden_dim), jnp.float32) * s,
        "whh_e": jax.random.normal(ks[2], (hidden_dim, 4 * hidden_dim), jnp.float32) * s,
        "b_e":   jax.random.normal(ks[3], (1, 4 * hidden_dim), jnp.float32) * s,
        # decoder LSTM (hidden_dim -> emb_dim)
        "wih_d": jax.random.normal(ks[4], (hidden_dim, 4 * emb_dim), jnp.float32) * s,
        "whh_d": jax.random.normal(ks[5], (emb_dim, 4 * emb_dim), jnp.float32) * s,
        "b_d":   jax.random.normal(ks[6], (1, 4 * emb_dim), jnp.float32) * s,
        # output linear (emb_dim -> vocab_size+1)
        "wo":    jax.random.normal(ks[7], (emb_dim, V), jnp.float32) * s,
        "bo":    jax.random.normal(ks[8], (1, V), jnp.float32) * s,
    }


if __name__ == "__main__":
    B, T = 2, 8
    emb_dim, hidden_dim, vocab_size = 64, 32, 20   # V = vocab_size + 1 = 21

    key = jax.random.PRNGKey(0)
    kp, kx = jax.random.split(key)
    params = init_params(kp, vocab_size, emb_dim, hidden_dim)
    x_tokens = jax.random.randint(kx, (B, T), 0, vocab_size + 1, dtype=jnp.int32)

    logits = lstm_autoencoder_forward(x_tokens, params)
    logits = jax.block_until_ready(logits)

    ref = jax.block_until_ready(reference_forward(x_tokens, params))
    assert logits.shape == (B, T, vocab_size + 1)
    # bf16 MXU operands in the kernels -> looser tolerance than the f32 version
    assert jnp.allclose(logits, ref, rtol=2e-2, atol=2e-2), "mismatch vs reference"

    print("KERNEL_OK")
</pallas_src>

<mosaic_0001>
module attributes {stable_mosaic.version = 11 : i64} {
  func.func @encoder_kernel(%arg0: i32, %arg1: i32, %arg2: memref<8x8x128xf32, #tpu.memory_space<vmem>>, %arg3: memref<128x512xbf16, #tpu.memory_space<vmem>>, %arg4: memref<128x512xbf16, #tpu.memory_space<vmem>>, %arg5: memref<1x512xf32, #tpu.memory_space<vmem>>, %arg6: memref<8x128xf32, #tpu.memory_space<vmem>>, %arg7: memref<64x512xf32, #tpu.memory_space<vmem>>, %arg8: memref<8x128xf32, #tpu.memory_space<vmem>>, %arg9: memref<8x128xf32, #tpu.memory_space<vmem>>) attributes {dimension_semantics = [#tpu.dimension_semantics<parallel>, #tpu.dimension_semantics<arbitrary>], iteration_bounds = array<i64: 1, 1>, scalar_prefetch = 0 : i64, scratch_operands = 3 : i64, tpu.core_type = #tpu.core_type<tc>, window_params = [{transform_indices = @transform_0, window_bounds = array<i64: 8, 8, 128>}, {pipeline_mode = #tpu.pipeline_mode<synchronous>, transform_indices = @transform_1, window_bounds = array<i64: 128, 512>}, {pipeline_mode = #tpu.pipeline_mode<synchronous>, transform_indices = @transform_2, window_bounds = array<i64: 128, 512>}, {pipeline_mode = #tpu.pipeline_mode<synchronous>, transform_indices = @transform_3, window_bounds = array<i64: 1, 512>}, {transform_indices = @transform_4, window_bounds = array<i64: 8, 128>}]} {
    %c0_i32 = arith.constant 0 : i32
    %0 = arith.cmpi eq, %arg1, %c0_i32 : i32
    %1 = arith.extui %0 : i1 to i32
    %c0_i32_0 = arith.constant 0 : i32
    %2 = arith.cmpi ne, %1, %c0_i32_0 : i32
    scf.if %2 {
      %cst_118 = arith.constant 0.000000e+00 : f32
      %322 = vector.broadcast %cst_118 : f32 to vector<8x128xf32>
      %c0_119 = arith.constant 0 : index
      %c0_120 = arith.constant 0 : index
      %323 = vector.load %arg8[%c0_119, %c0_120] : memref<8x128xf32, #tpu.memory_space<vmem>>, vector<8x128xf32>
      tpu.vector_store %arg8[%c0_119, %c0_120], %322 {strides = array<i32>} : memref<8x128xf32, #tpu.memory_space<vmem>>, vector<8x128xf32>,
      %cst_121 = arith.constant 0.000000e+00 : f32
      %324 = vector.broadcast %cst_121 : f32 to vector<8x128xf32>
      %c0_122 = arith.constant 0 : index
      %c0_123 = arith.constant 0 : index
      %325 = vector.load %arg9[%c0_122, %c0_123] : memref<8x128xf32, #tpu.memory_space<vmem>>, vector<8x128xf32>
      tpu.vector_store %arg9[%c0_122, %c0_123], %324 {strides = array<i32>} : memref<8x128xf32, #tpu.memory_space<vmem>>, vector<8x128xf32>,
    } else {
    }
    %c0 = arith.constant 0 : index
    %c0_1 = arith.constant 0 : index
    %c0_2 = arith.constant 0 : index
    %3 = vector.load %arg2[%c0, %c0_1, %c0_2] : memref<8x8x128xf32, #tpu.memory_space<vmem>>, vector<8x8x128xf32>
    %4 = vector.shape_cast %3 : vector<8x8x128xf32> to vector<64x128xf32>
    %5 = arith.truncf %4 : vector<64x128xf32> to vector<64x128xbf16>
    %c0_3 = arith.constant 0 : index
    %c0_4 = arith.constant 0 : index
    %6 = vector.load %arg3[%c0_3, %c0_4] : memref<128x512xbf16, #tpu.memory_space<vmem>>, vector<128x512xbf16>
    %cst = arith.constant dense<0.000000e+00> : vector<64x512xf32>
    %7 = tpu.matmul %5, %6, %cst {dimension_numbers = #tpu.dot_dimension_numbers<[1], [0], [0], [1], [0, 0, 1, 1], [], []>} : vector<64x128xbf16>, vector<128x512xbf16>, vector<64x512xf32> -> vector<64x512xf32>
    %c0_5 = arith.constant 0 : index
    %c0_6 = arith.constant 0 : index
    %8 = vector.load %arg5[%c0_5, %c0_6] : memref<1x512xf32, #tpu.memory_space<vmem>>, vector<1x512xf32>
    %9 = vector.broadcast %8 : vector<1x512xf32> to vector<64x512xf32>
    %10 = arith.addf %7, %9 : vector<64x512xf32>
    %c0_7 = arith.constant 0 : index
    %c0_8 = arith.constant 0 : index
    %11 = vector.load %arg7[%c0_7, %c0_8] : memref<64x512xf32, #tpu.memory_space<vmem>>, vector<64x512xf32>
    tpu.vector_store %arg7[%c0_7, %c0_8], %10 {strides = array<i32>} : memref<64x512xf32, #tpu.memory_space<vmem>>, vector<64x512xf32>,
    %c0_9 = arith.constant 0 : index
    %c0_10 = arith.constant 0 : index
    %12 = vector.load %arg4[%c0_9, %c0_10] : memref<128x512xbf16, #tpu.memory_space<vmem>>, vector<128x512xbf16>
    %c0_11 = arith.constant 0 : index
    %c0_12 = arith.constant 0 : index
    %13 = vector.load %arg8[%c0_11, %c0_12] : memref<8x128xf32, #tpu.memory_space<vmem>>, vector<8x128xf32>
    %c0_13 = arith.constant 0 : index
    %c0_14 = arith.constant 0 : index
    %14 = vector.load %arg9[%c0_13, %c0_14] : memref<8x128xf32, #tpu.memory_space<vmem>>, vector<8x128xf32>
    %c0_i32_15 = arith.constant 0 : i32
    %c8_i32 = arith.constant 8 : i32
    %15 = arith.muli %c0_i32_15, %c8_i32 : i32
    %16 = tpu.assume_multiple %15, 8 : i32
    %17 = arith.index_cast %16 : i32 to index
    %c0_16 = arith.constant 0 : index
    %18 = vector.load %arg7[%17, %c0_16] : memref<64x512xf32, #tpu.memory_space<vmem>>, vector<8x512xf32>
    %19 = arith.truncf %13 : vector<8x128xf32> to vector<8x128xbf16>
    %cst_17 = arith.constant dense<0.000000e+00> : vector<8x512xf32>
    %20 = tpu.matmul %19, %12, %cst_17 {dimension_numbers = #tpu.dot_dimension_numbers<[1], [0], [0], [1], [0, 0, 1, 1], [], []>} : vector<8x128xbf16>, vector<128x512xbf16>, vector<8x512xf32> -> vector<8x512xf32>
    %21 = arith.addf %18, %20 : vector<8x512xf32>
    %22 = vector.extract_strided_slice %21 {offsets = [0, 0], sizes = [8, 128], strides = [1, 1]} : vector<8x512xf32> to vector<8x128xf32>
    %cst_18 = arith.constant 5.000000e-01 : f32
    %23 = vector.broadcast %cst_18 : f32 to vector<8x128xf32>
    %24 = arith.mulf %23, %22 : vector<8x128xf32>
    %25 = math.tanh %24 : vector<8x128xf32>
    %cst_19 = arith.constant 5.000000e-01 : f32
    %26 = vector.broadcast %cst_19 : f32 to vector<8x128xf32>
    %27 = arith.mulf %26, %25 : vector<8x128xf32>
    %cst_20 = arith.constant 5.000000e-01 : f32
    %28 = vector.broadcast %cst_20 : f32 to vector<8x128xf32>
    %29 = arith.addf %27, %28 : vector<8x128xf32>
    %30 = vector.extract_strided_slice %21 {offsets = [0, 128], sizes = [8, 128], strides = [1, 1]} : vector<8x512xf32> to vector<8x128xf32>
    %cst_21 = arith.constant 5.000000e-01 : f32
    %31 = vector.broadcast %cst_21 : f32 to vector<8x128xf32>
    %32 = arith.mulf %31, %30 : vector<8x128xf32>
    %33 = math.tanh %32 : vector<8x128xf32>
    %cst_22 = arith.constant 5.000000e-01 : f32
    %34 = vector.broadcast %cst_22 : f32 to vector<8x128xf32>
    %35 = arith.mulf %34, %33 : vector<8x128xf32>
    %cst_23 = arith.constant 5.000000e-01 : f32
    %36 = vector.broadcast %cst_23 : f32 to vector<8x128xf32>
    %37 = arith.addf %35, %36 : vector<8x128xf32>
    %38 = vector.extract_strided_slice %21 {offsets = [0, 256], sizes = [8, 128], strides = [1, 1]} : vector<8x512xf32> to vector<8x128xf32>
    %39 = math.tanh %38 : vector<8x128xf32>
    %40 = vector.extract_strided_slice %21 {offsets = [0, 384], sizes = [8, 128], strides = [1, 1]} : vector<8x512xf32> to vector<8x128xf32>
    %cst_24 = arith.constant 5.000000e-01 : f32
    %41 = vector.broadcast %cst_24 : f32 to vector<8x128xf32>
    %42 = arith.mulf %41, %40 : vector<8x128xf32>
    %43 = math.tanh %42 : vector<8x128xf32>
    %cst_25 = arith.constant 5.000000e-01 : f32
    %44 = vector.broadcast %cst_25 : f32 to vector<8x128xf32>
    %45 = arith.mulf %44, %43 : vector<8x128xf32>
    %cst_26 = arith.constant 5.000000e-01 : f32
    %46 = vector.broadcast %cst_26 : f32 to vector<8x128xf32>
    %47 = arith.addf %45, %46 : vector<8x128xf32>
    %48 = arith.mulf %37, %14 : vector<8x128xf32>
    %49 = arith.mulf %29, %39 : vector<8x128xf32>
    %50 = arith.addf %48, %49 : vector<8x128xf32>
    %51 = math.tanh %50 : vector<8x128xf32>
    %52 = arith.mulf %47, %51 : vector<8x128xf32>
    %c1_i32 = arith.constant 1 : i32
    %c8_i32_27 = arith.constant 8 : i32
    %53 = arith.muli %c1_i32, %c8_i32_27 : i32
    %54 = tpu.assume_multiple %53, 8 : i32
    %55 = arith.index_cast %54 : i32 to index
    %c0_28 = arith.constant 0 : index
    %56 = vector.load %arg7[%55, %c0_28] : memref<64x512xf32, #tpu.memory_space<vmem>>, vector<8x512xf32>
    %57 = arith.truncf %52 : vector<8x128xf32> to vector<8x128xbf16>
    %cst_29 = arith.constant dense<0.000000e+00> : vector<8x512xf32>
    %58 = tpu.matmul %57, %12, %cst_29 {dimension_numbers = #tpu.dot_dimension_numbers<[1], [0], [0], [1], [0, 0, 1, 1], [], []>} : vector<8x128xbf16>, vector<128x512xbf16>, vector<8x512xf32> -> vector<8x512xf32>
    %59 = arith.addf %56, %58 : vector<8x512xf32>
    %60 = vector.extract_strided_slice %59 {offsets = [0, 0], sizes = [8, 128], strides = [1, 1]} : vector<8x512xf32> to vector<8x128xf32>
    %cst_30 = arith.constant 5.000000e-01 : f32
    %61 = vector.broadcast %cst_30 : f32 to vector<8x128xf32>
    %62 = arith.mulf %61, %60 : vector<8x128xf32>
    %63 = math.tanh %62 : vector<8x128xf32>
    %cst_31 = arith.constant 5.000000e-01 : f32
    %64 = vector.broadcast %cst_31 : f32 to vector<8x128xf32>
    %65 = arith.mulf %64, %63 : vector<8x128xf32>
    %cst_32 = arith.constant 5.000000e-01 : f32
    %66 = vector.broadcast %cst_32 : f32 to vector<8x128xf32>
    %67 = arith.addf %65, %66 : vector<8x128xf32>
    %68 = vector.extract_strided_slice %59 {offsets = [0, 128], sizes = [8, 128], strides = [1, 1]} : vector<8x512xf32> to vector<8x128xf32>
    %cst_33 = arith.constant 5.000000e-01 : f32
    %69 = vector.broadcast %cst_33 : f32 to vector<8x128xf32>
    %70 = arith.mulf %69, %68 : vector<8x128xf32>
    %71 = math.tanh %70 : vector<8x128xf32>
    %cst_34 = arith.constant 5.000000e-01 : f32
    %72 = vector.broadcast %cst_34 : f32 to vector<8x128xf32>
    %73 = arith.mulf %72, %71 : vector<8x128xf32>
    %cst_35 = arith.constant 5.000000e-01 : f32
    %74 = vector.broadcast %cst_35 : f32 to vector<8x128xf32>
    %75 = arith.addf %73, %74 : vector<8x128xf32>
    %76 = vector.extract_strided_slice %59 {offsets = [0, 256], sizes = [8, 128], strides = [1, 1]} : vector<8x512xf32> to vector<8x128xf32>
    %77 = math.tanh %76 : vector<8x128xf32>
    %78 = vector.extract_strided_slice %59 {offsets = [0, 384], sizes = [8, 128], strides = [1, 1]} : vector<8x512xf32> to vector<8x128xf32>
    %cst_36 = arith.constant 5.000000e-01 : f32
    %79 = vector.broadcast %cst_36 : f32 to vector<8x128xf32>
    %80 = arith.mulf %79, %78 : vector<8x128xf32>
    %81 = math.tanh %80 : vector<8x128xf32>
    %cst_37 = arith.constant 5.000000e-01 : f32
    %82 = vector.broadcast %cst_37 : f32 to vector<8x128xf32>
    %83 = arith.mulf %82, %81 : vector<8x128xf32>
    %cst_38 = arith.constant 5.000000e-01 : f32
    %84 = vector.broadcast %cst_38 : f32 to vector<8x128xf32>
    %85 = arith.addf %83, %84 : vector<8x128xf32>
    %86 = arith.mulf %75, %50 : vector<8x128xf32>
    %87 = arith.mulf %67, %77 : vector<8x128xf32>
    %88 = arith.addf %86, %87 : vector<8x128xf32>
    %89 = math.tanh %88 : vector<8x128xf32>
    %90 = arith.mulf %85, %89 : vector<8x128xf32>
    %c2_i32 = arith.constant 2 : i32
    %c8_i32_39 = arith.constant 8 : i32
    %91 = arith.muli %c2_i32, %c8_i32_39 : i32
    %92 = tpu.assume_multiple %91, 8 : i32
    %93 = arith.index_cast %92 : i32 to index
    %c0_40 = arith.constant 0 : index
    %94 = vector.load %arg7[%93, %c0_40] : memref<64x512xf32, #tpu.memory_space<vmem>>, vector<8x512xf32>
    %95 = arith.truncf %90 : vector<8x128xf32> to vector<8x128xbf16>
    %cst_41 = arith.constant dense<0.000000e+00> : vector<8x512xf32>
    %96 = tpu.matmul %95, %12, %cst_41 {dimension_numbers = #tpu.dot_dimension_numbers<[1], [0], [0], [1], [0, 0, 1, 1], [], []>} : vector<8x128xbf16>, vector<128x512xbf16>, vector<8x512xf32> -> vector<8x512xf32>
    %97 = arith.addf %94, %96 : vector<8x512xf32>
    %98 = vector.extract_strided_slice %97 {offsets = [0, 0], sizes = [8, 128], strides = [1, 1]} : vector<8x512xf32> to vector<8x128xf32>
    %cst_42 = arith.constant 5.000000e-01 : f32
    %99 = vector.broadcast %cst_42 : f32 to vector<8x128xf32>
    %100 = arith.mulf %99, %98 : vector<8x128xf32>
    %101 = math.tanh %100 : vector<8x128xf32>
    %cst_43 = arith.constant 5.000000e-01 : f32
    %102 = vector.broadcast %cst_43 : f32 to vector<8x128xf32>
    %103 = arith.mulf %102, %101 : vector<8x128xf32>
    %cst_44 = arith.constant 5.000000e-01 : f32
    %104 = vector.broadcast %cst_44 : f32 to vector<8x128xf32>
    %105 = arith.addf %103, %104 : vector<8x128xf32>
    %106 = vector.extract_strided_slice %97 {offsets = [0, 128], sizes = [8, 128], strides = [1, 1]} : vector<8x512xf32> to vector<8x128xf32>
    %cst_45 = arith.constant 5.000000e-01 : f32
    %107 = vector.broadcast %cst_45 : f32 to vector<8x128xf32>
    %108 = arith.mulf %107, %106 : vector<8x128xf32>
    %109 = math.tanh %108 : vector<8x128xf32>
    %cst_46 = arith.constant 5.000000e-01 : f32
    %110 = vector.broadcast %cst_46 : f32 to vector<8x128xf32>
    %111 = arith.mulf %110, %109 : vector<8x128xf32>
    %cst_47 = arith.constant 5.000000e-01 : f32
    %112 = vector.broadcast %cst_47 : f32 to vector<8x128xf32>
    %113 = arith.addf %111, %112 : vector<8x128xf32>
    %114 = vector.extract_strided_slice %97 {offsets = [0, 256], sizes = [8, 128], strides = [1, 1]} : vector<8x512xf32> to vector<8x128xf32>
    %115 = math.tanh %114 : vector<8x128xf32>
    %116 = vector.extract_strided_slice %97 {offsets = [0, 384], sizes = [8, 128], strides = [1, 1]} : vector<8x512xf32> to vector<8x128xf32>
    %cst_48 = arith.constant 5.000000e-01 : f32
    %117 = vector.broadcast %cst_48 : f32 to vector<8x128xf32>
    %118 = arith.mulf %117, %116 : vector<8x128xf32>
    %119 = math.tanh %118 : vector<8x128xf32>
    %cst_49 = arith.constant 5.000000e-01 : f32
    %120 = vector.broadcast %cst_49 : f32 to vector<8x128xf32>
    %121 = arith.mulf %120, %119 : vector<8x128xf32>
    %cst_50 = arith.constant 5.000000e-01 : f32
    %122 = vector.broadcast %cst_50 : f32 to vector<8x128xf32>
    %123 = arith.addf %121, %122 : vector<8x128xf32>
    %124 = arith.mulf %113, %88 : vector<8x128xf32>
    %125 = arith.mulf %105, %115 : vector<8x128xf32>
    %126 = arith.addf %124, %125 : vector<8x128xf32>
    %127 = math.tanh %126 : vector<8x128xf32>
    %128 = arith.mulf %123, %127 : vector<8x128xf32>
    %c3_i32 = arith.constant 3 : i32
    %c8_i32_51 = arith.constant 8 : i32
    %129 = arith.muli %c3_i32, %c8_i32_51 : i32
    %130 = tpu.assume_multiple %129, 8 : i32
    %131 = arith.index_cast %130 : i32 to index
    %c0_52 = arith.constant 0 : index
    %132 = vector.load %arg7[%131, %c0_52] : memref<64x512xf32, #tpu.memory_space<vmem>>, vector<8x512xf32>
    %133 = arith.truncf %128 : vector<8x128xf32> to vector<8x128xbf16>
    %cst_53 = arith.constant dense<0.000000e+00> : vector<8x512xf32>
    %134 = tpu.matmul %133, %12, %cst_53 {dimension_numbers = #tpu.dot_dimension_numbers<[1], [0], [0], [1], [0, 0, 1, 1], [], []>} : vector<8x128xbf16>, vector<128x512xbf16>, vector<8x512xf32> -> vector<8x512xf32>
    %135 = arith.addf %132, %134 : vector<8x512xf32>
    %136 = vector.extract_strided_slice %135 {offsets = [0, 0], sizes = [8, 128], strides = [1, 1]} : vector<8x512xf32> to vector<8x128xf32>
    %cst_54 = arith.constant 5.000000e-01 : f32
    %137 = vector.broadcast %cst_54 : f32 to vector<8x128xf32>
    %138 = arith.mulf %137, %136 : vector<8x128xf32>
    %139 = math.tanh %138 : vector<8x128xf32>
    %cst_55 = arith.constant 5.000000e-01 : f32
    %140 = vector.broadcast %cst_55 : f32 to vector<8x128xf32>
    %141 = arith.mulf %140, %139 : vector<8x128xf32>
    %cst_56 = arith.constant 5.000000e-01 : f32
    %142 = vector.broadcast %cst_56 : f32 to vector<8x128xf32>
    %143 = arith.addf %141, %142 : vector<8x128xf32>
    %144 = vector.extract_strided_slice %135 {offsets = [0, 128], sizes = [8, 128], strides = [1, 1]} : vector<8x512xf32> to vector<8x128xf32>
    %cst_57 = arith.constant 5.000000e-01 : f32
    %145 = vector.broadcast %cst_57 : f32 to vector<8x128xf32>
    %146 = arith.mulf %145, %144 : vector<8x128xf32>
    %147 = math.tanh %146 : vector<8x128xf32>
    %cst_58 = arith.constant 5.000000e-01 : f32
    %148 = vector.broadcast %cst_58 : f32 to vector<8x128xf32>
    %149 = arith.mulf %148, %147 : vector<8x128xf32>
    %cst_59 = arith.constant 5.000000e-01 : f32
    %150 = vector.broadcast %cst_59 : f32 to vector<8x128xf32>
    %151 = arith.addf %149, %150 : vector<8x128xf32>
    %152 = vector.extract_strided_slice %135 {offsets = [0, 256], sizes = [8, 128], strides = [1, 1]} : vector<8x512xf32> to vector<8x128xf32>
    %153 = math.tanh %152 : vector<8x128xf32>
    %154 = vector.extract_strided_slice %135 {offsets = [0, 384], sizes = [8, 128], strides = [1, 1]} : vector<8x512xf32> to vector<8x128xf32>
    %cst_60 = arith.constant 5.000000e-01 : f32
    %155 = vector.broadcast %cst_60 : f32 to vector<8x128xf32>
    %156 = arith.mulf %155, %154 : vector<8x128xf32>
    %157 = math.tanh %156 : vector<8x128xf32>
    %cst_61 = arith.constant 5.000000e-01 : f32
    %158 = vector.broadcast %cst_61 : f32 to vector<8x128xf32>
    %159 = arith.mulf %158, %157 : vector<8x128xf32>
    %cst_62 = arith.constant 5.000000e-01 : f32
    %160 = vector.broadcast %cst_62 : f32 to vector<8x128xf32>
    %161 = arith.addf %159, %160 : vector<8x128xf32>
    %162 = arith.mulf %151, %126 : vector<8x128xf32>
    %163 = arith.mulf %143, %153 : vector<8x128xf32>
    %164 = arith.addf %162, %163 : vector<8x128xf32>
    %165 = math.tanh %164 : vector<8x128xf32>
    %166 = arith.mulf %161, %165 : vector<8x128xf32>
    %c4_i32 = arith.constant 4 : i32
    %c8_i32_63 = arith.constant 8 : i32
    %167 = arith.muli %c4_i32, %c8_i32_63 : i32
    %168 = tpu.assume_multiple %167, 8 : i32
    %169 = arith.index_cast %168 : i32 to index
    %c0_64 = arith.constant 0 : index
    %170 = vector.load %arg7[%169, %c0_64] : memref<64x512xf32, #tpu.memory_space<vmem>>, vector<8x512xf32>
    %171 = arith.truncf %166 : vector<8x128xf32> to vector<8x128xbf16>
    %cst_65 = arith.constant dense<0.000000e+00> : vector<8x512xf32>
    %172 = tpu.matmul %171, %12, %cst_65 {dimension_numbers = #tpu.dot_dimension_numbers<[1], [0], [0], [1], [0, 0, 1, 1], [], []>} : vector<8x128xbf16>, vector<128x512xbf16>, vector<8x512xf32> -> vector<8x512xf32>
    %173 = arith.addf %170, %172 : vector<8x512xf32>
    %174 = vector.extract_strided_slice %173 {offsets = [0, 0], sizes = [8, 128], strides = [1, 1]} : vector<8x512xf32> to vector<8x128xf32>
    %cst_66 = arith.constant 5.000000e-01 : f32
    %175 = vector.broadcast %cst_66 : f32 to vector<8x128xf32>
    %176 = arith.mulf %175, %174 : vector<8x128xf32>
    %177 = math.tanh %176 : vector<8x128xf32>
    %cst_67 = arith.constant 5.000000e-01 : f32
    %178 = vector.broadcast %cst_67 : f32 to vector<8x128xf32>
    %179 = arith.mulf %178, %177 : vector<8x128xf32>
    %cst_68 = arith.constant 5.000000e-01 : f32
    %180 = vector.broadcast %cst_68 : f32 to vector<8x128xf32>
    %181 = arith.addf %179, %180 : vector<8x128xf32>
    %182 = vector.extract_strided_slice %173 {offsets = [0, 128], sizes = [8, 128], strides = [1, 1]} : vector<8x512xf32> to vector<8x128xf32>
    %cst_69 = arith.constant 5.000000e-01 : f32
    %183 = vector.broadcast %cst_69 : f32 to vector<8x128xf32>
    %184 = arith.mulf %183, %182 : vector<8x128xf32>
    %185 = math.tanh %184 : vector<8x128xf32>
    %cst_70 = arith.constant 5.000000e-01 : f32
    %186 = vector.broadcast %cst_70 : f32 to vector<8x128xf32>
    %187 = arith.mulf %186, %185 : vector<8x128xf32>
    %cst_71 = arith.constant 5.000000e-01 : f32
    %188 = vector.broadcast %cst_71 : f32 to vector<8x128xf32>
    %189 = arith.addf %187, %188 : vector<8x128xf32>
    %190 = vector.extract_strided_slice %173 {offsets = [0, 256], sizes = [8, 128], strides = [1, 1]} : vector<8x512xf32> to vector<8x128xf32>
    %191 = math.tanh %190 : vector<8x128xf32>
    %192 = vector.extract_strided_slice %173 {offsets = [0, 384], sizes = [8, 128], strides = [1, 1]} : vector<8x512xf32> to vector<8x128xf32>
    %cst_72 = arith.constant 5.000000e-01 : f32
    %193 = vector.broadcast %cst_72 : f32 to vector<8x128xf32>
    %194 = arith.mulf %193, %192 : vector<8x128xf32>
    %195 = math.tanh %194 : vector<8x128xf32>
    %cst_73 = arith.constant 5.000000e-01 : f32
    %196 = vector.broadcast %cst_73 : f32 to vector<8x128xf32>
    %197 = arith.mulf %196, %195 : vector<8x128xf32>
    %cst_74 = arith.constant 5.000000e-01 : f32
    %198 = vector.broadcast %cst_74 : f32 to vector<8x128xf32>
    %199 = arith.addf %197, %198 : vector<8x128xf32>
    %200 = arith.mulf %189, %164 : vector<8x128xf32>
    %201 = arith.mulf %181, %191 : vector<8x128xf32>
    %202 = arith.addf %200, %201 : vector<8x128xf32>
    %203 = math.tanh %202 : vector<8x128xf32>
    %204 = arith.mulf %199, %203 : vector<8x128xf32>
    %c5_i32 = arith.constant 5 : i32
    %c8_i32_75 = arith.constant 8 : i32
    %205 = arith.muli %c5_i32, %c8_i32_75 : i32
    %206 = tpu.assume_multiple %205, 8 : i32
    %207 = arith.index_cast %206 : i32 to index
    %c0_76 = arith.constant 0 : index
    %208 = vector.load %arg7[%207, %c0_76] : memref<64x512xf32, #tpu.memory_space<vmem>>, vector<8x512xf32>
    %209 = arith.truncf %204 : vector<8x128xf32> to vector<8x128xbf16>
    %cst_77 = arith.constant dense<0.000000e+00> : vector<8x512xf32>
    %210 = tpu.matmul %209, %12, %cst_77 {dimension_numbers = #tpu.dot_dimension_numbers<[1], [0], [0], [1], [0, 0, 1, 1], [], []>} : vector<8x128xbf16>, vector<128x512xbf16>, vector<8x512xf32> -> vector<8x512xf32>
    %211 = arith.addf %208, %210 : vector<8x512xf32>
    %212 = vector.extract_strided_slice %211 {offsets = [0, 0], sizes = [8, 128], strides = [1, 1]} : vector<8x512xf32> to vector<8x128xf32>
    %cst_78 = arith.constant 5.000000e-01 : f32
    %213 = vector.broadcast %cst_78 : f32 to vector<8x128xf32>
    %214 = arith.mulf %213, %212 : vector<8x128xf32>
    %215 = math.tanh %214 : vector<8x128xf32>
    %cst_79 = arith.constant 5.000000e-01 : f32
    %216 = vector.broadcast %cst_79 : f32 to vector<8x128xf32>
    %217 = arith.mulf %216, %215 : vector<8x128xf32>
    %cst_80 = arith.constant 5.000000e-01 : f32
    %218 = vector.broadcast %cst_80 : f32 to vector<8x128xf32>
    %219 = arith.addf %217, %218 : vector<8x128xf32>
    %220 = vector.extract_strided_slice %211 {offsets = [0, 128], sizes = [8, 128], strides = [1, 1]} : vector<8x512xf32> to vector<8x128xf32>
    %cst_81 = arith.constant 5.000000e-01 : f32
    %221 = vector.broadcast %cst_81 : f32 to vector<8x128xf32>
    %222 = arith.mulf %221, %220 : vector<8x128xf32>
    %223 = math.tanh %222 : vector<8x128xf32>
    %cst_82 = arith.constant 5.000000e-01 : f32
    %224 = vector.broadcast %cst_82 : f32 to vector<8x128xf32>
    %225 = arith.mulf %224, %223 : vector<8x128xf32>
    %cst_83 = arith.constant 5.000000e-01 : f32
    %226 = vector.broadcast %cst_83 : f32 to vector<8x128xf32>
    %227 = arith.addf %225, %226 : vector<8x128xf32>
    %228 = vector.extract_strided_slice %211 {offsets = [0, 256], sizes = [8, 128], strides = [1, 1]} : vector<8x512xf32> to vector<8x128xf32>
    %229 = math.tanh %228 : vector<8x128xf32>
    %230 = vector.extract_strided_slice %211 {offsets = [0, 384], sizes = [8, 128], strides = [1, 1]} : vector<8x512xf32> to vector<8x128xf32>
    %cst_84 = arith.constant 5.000000e-01 : f32
    %231 = vector.broadcast %cst_84 : f32 to vector<8x128xf32>
    %232 = arith.mulf %231, %230 : vector<8x128xf32>
    %233 = math.tanh %232 : vector<8x128xf32>
    %cst_85 = arith.constant 5.000000e-01 : f32
    %234 = vector.broadcast %cst_85 : f32 to vector<8x128xf32>
    %235 = arith.mulf %234, %233 : vector<8x128xf32>
    %cst_86 = arith.constant 5.000000e-01 : f32
    %236 = vector.broadcast %cst_86 : f32 to vector<8x128xf32>
    %237 = arith.addf %235, %236 : vector<8x128xf32>
    %238 = arith.mulf %227, %202 : vector<8x128xf32>
    %239 = arith.mulf %219, %229 : vector<8x128xf32>
    %240 = arith.addf %238, %239 : vector<8x128xf32>
    %241 = math.tanh %240 : vector<8x128xf32>
    %242 = arith.mulf %237, %241 : vector<8x128xf32>
    %c6_i32 = arith.constant 6 : i32
    %c8_i32_87 = arith.constant 8 : i32
    %243 = arith.muli %c6_i32, %c8_i32_87 : i32
    %244 = tpu.assume_multiple %243, 8 : i32
    %245 = arith.index_cast %244 : i32 to index
    %c0_88 = arith.constant 0 : index
    %246 = vector.load %arg7[%245, %c0_88] : memref<64x512xf32, #tpu.memory_space<vmem>>, vector<8x512xf32>
    %247 = arith.truncf %242 : vector<8x128xf32> to vector<8x128xbf16>
    %cst_89 = arith.constant dense<0.000000e+00> : vector<8x512xf32>
    %248 = tpu.matmul %247, %12, %cst_89 {dimension_numbers = #tpu.dot_dimension_numbers<[1], [0], [0], [1], [0, 0, 1, 1], [], []>} : vector<8x128xbf16>, vector<128x512xbf16>, vector<8x512xf32> -> vector<8x512xf32>
    %249 = arith.addf %246, %248 : vector<8x512xf32>
    %250 = vector.extract_strided_slice %249 {offsets = [0, 0], sizes = [8, 128], strides = [1, 1]} : vector<8x512xf32> to vector<8x128xf32>
    %cst_90 = arith.constant 5.000000e-01 : f32
    %251 = vector.broadcast %cst_90 : f32 to vector<8x128xf32>
    %252 = arith.mulf %251, %250 : vector<8x128xf32>
    %253 = math.tanh %252 : vector<8x128xf32>
    %cst_91 = arith.constant 5.000000e-01 : f32
    %254 = vector.broadcast %cst_91 : f32 to vector<8x128xf32>
    %255 = arith.mulf %254, %253 : vector<8x128xf32>
    %cst_92 = arith.constant 5.000000e-01 : f32
    %256 = vector.broadcast %cst_92 : f32 to vector<8x128xf32>
    %257 = arith.addf %255, %256 : vector<8x128xf32>
    %258 = vector.extract_strided_slice %249 {offsets = [0, 128], sizes = [8, 128], strides = [1, 1]} : vector<8x512xf32> to vector<8x128xf32>
    %cst_93 = arith.constant 5.000000e-01 : f32
    %259 = vector.broadcast %cst_93 : f32 to vector<8x128xf32>
    %260 = arith.mulf %259, %258 : vector<8x128xf32>
    %261 = math.tanh %260 : vector<8x128xf32>
    %cst_94 = arith.constant 5.000000e-01 : f32
    %262 = vector.broadcast %cst_94 : f32 to vector<8x128xf32>
    %263 = arith.mulf %262, %261 : vector<8x128xf32>
    %cst_95 = arith.constant 5.000000e-01 : f32
    %264 = vector.broadcast %cst_95 : f32 to vector<8x128xf32>
    %265 = arith.addf %263, %264 : vector<8x128xf32>
    %266 = vector.extract_strided_slice %249 {offsets = [0, 256], sizes = [8, 128], strides = [1, 1]} : vector<8x512xf32> to vector<8x128xf32>
    %267 = math.tanh %266 : vector<8x128xf32>
    %268 = vector.extract_strided_slice %249 {offsets = [0, 384], sizes = [8, 128], strides = [1, 1]} : vector<8x512xf32> to vector<8x128xf32>
    %cst_96 = arith.constant 5.000000e-01 : f32
    %269 = vector.broadcast %cst_96 : f32 to vector<8x128xf32>
    %270 = arith.mulf %269, %268 : vector<8x128xf32>
    %271 = math.tanh %270 : vector<8x128xf32>
    %cst_97 = arith.constant 5.000000e-01 : f32
    %272 = vector.broadcast %cst_97 : f32 to vector<8x128xf32>
    %273 = arith.mulf %272, %271 : vector<8x128xf32>
    %cst_98 = arith.constant 5.000000e-01 : f32
    %274 = vector.broadcast %cst_98 : f32 to vector<8x128xf32>
    %275 = arith.addf %273, %274 : vector<8x128xf32>
    %276 = arith.mulf %265, %240 : vector<8x128xf32>
    %277 = arith.mulf %257, %267 : vector<8x128xf32>
    %278 = arith.addf %276, %277 : vector<8x128xf32>
    %279 = math.tanh %278 : vector<8x128xf32>
    %280 = arith.mulf %275, %279 : vector<8x128xf32>
    %c7_i32 = arith.constant 7 : i32
    %c8_i32_99 = arith.constant 8 : i32
    %281 = arith.muli %c7_i32, %c8_i32_99 : i32
    %282 = tpu.assume_multiple %281, 8 : i32
    %283 = arith.index_cast %282 : i32 to index
    %c0_100 = arith.constant 0 : index
    %284 = vector.load %arg7[%283, %c0_100] : memref<64x512xf32, #tpu.memory_space<vmem>>, vector<8x512xf32>
    %285 = arith.truncf %280 : vector<8x128xf32> to vector<8x128xbf16>
    %cst_101 = arith.constant dense<0.000000e+00> : vector<8x512xf32>
    %286 = tpu.matmul %285, %12, %cst_101 {dimension_numbers = #tpu.dot_dimension_numbers<[1], [0], [0], [1], [0, 0, 1, 1], [], []>} : vector<8x128xbf16>, vector<128x512xbf16>, vector<8x512xf32> -> vector<8x512xf32>
    %287 = arith.addf %284, %286 : vector<8x512xf32>
    %288 = vector.extract_strided_slice %287 {offsets = [0, 0], sizes = [8, 128], strides = [1, 1]} : vector<8x512xf32> to vector<8x128xf32>
    %cst_102 = arith.constant 5.000000e-01 : f32
    %289 = vector.broadcast %cst_102 : f32 to vector<8x128xf32>
    %290 = arith.mulf %289, %288 : vector<8x128xf32>
    %291 = math.tanh %290 : vector<8x128xf32>
    %cst_103 = arith.constant 5.000000e-01 : f32
    %292 = vector.broadcast %cst_103 : f32 to vector<8x128xf32>
    %293 = arith.mulf %292, %291 : vector<8x128xf32>
    %cst_104 = arith.constant 5.000000e-01 : f32
    %294 = vector.broadcast %cst_104 : f32 to vector<8x128xf32>
    %295 = arith.addf %293, %294 : vector<8x128xf32>
    %296 = vector.extract_strided_slice %287 {offsets = [0, 128], sizes = [8, 128], strides = [1, 1]} : vector<8x512xf32> to vector<8x128xf32>
    %cst_105 = arith.constant 5.000000e-01 : f32
    %297 = vector.broadcast %cst_105 : f32 to vector<8x128xf32>
    %298 = arith.mulf %297, %296 : vector<8x128xf32>
    %299 = math.tanh %298 : vector<8x128xf32>
    %cst_106 = arith.constant 5.000000e-01 : f32
    %300 = vector.broadcast %cst_106 : f32 to vector<8x128xf32>
    %301 = arith.mulf %300, %299 : vector<8x128xf32>
    %cst_107 = arith.constant 5.000000e-01 : f32
    %302 = vector.broadcast %cst_107 : f32 to vector<8x128xf32>
    %303 = arith.addf %301, %302 : vector<8x128xf32>
    %304 = vector.extract_strided_slice %287 {offsets = [0, 256], sizes = [8, 128], strides = [1, 1]} : vector<8x512xf32> to vector<8x128xf32>
    %305 = math.tanh %304 : vector<8x128xf32>
    %306 = vector.extract_strided_slice %287 {offsets = [0, 384], sizes = [8, 128], strides = [1, 1]} : vector<8x512xf32> to vector<8x128xf32>
    %cst_108 = arith.constant 5.000000e-01 : f32
    %307 = vector.broadcast %cst_108 : f32 to vector<8x128xf32>
    %308 = arith.mulf %307, %306 : vector<8x128xf32>
    %309 = math.tanh %308 : vector<8x128xf32>
    %cst_109 = arith.constant 5.000000e-01 : f32
    %310 = vector.broadcast %cst_109 : f32 to vector<8x128xf32>
    %311 = arith.mulf %310, %309 : vector<8x128xf32>
    %cst_110 = arith.constant 5.000000e-01 : f32
    %312 = vector.broadcast %cst_110 : f32 to vector<8x128xf32>
    %313 = arith.addf %311, %312 : vector<8x128xf32>
    %314 = arith.mulf %303, %278 : vector<8x128xf32>
    %315 = arith.mulf %295, %305 : vector<8x128xf32>
    %316 = arith.addf %314, %315 : vector<8x128xf32>
    %317 = math.tanh %316 : vector<8x128xf32>
    %318 = arith.mulf %313, %317 : vector<8x128xf32>
    %c8_i32_111 = arith.constant 8 : i32
    %c0_112 = arith.constant 0 : index
    %c0_113 = arith.constant 0 : index
    %319 = vector.load %arg8[%c0_112, %c0_113] : memref<8x128xf32, #tpu.memory_space<vmem>>, vector<8x128xf32>
    tpu.vector_store %arg8[%c0_112, %c0_113], %318 {strides = array<i32>} : memref<8x128xf32, #tpu.memory_space<vmem>>, vector<8x128xf32>,
    %c0_114 = arith.constant 0 : index
    %c0_115 = arith.constant 0 : index
    %320 = vector.load %arg9[%c0_114, %c0_115] : memref<8x128xf32, #tpu.memory_space<vmem>>, vector<8x128xf32>
    tpu.vector_store %arg9[%c0_114, %c0_115], %316 {strides = array<i32>} : memref<8x128xf32, #tpu.memory_space<vmem>>, vector<8x128xf32>,
    %c0_116 = arith.constant 0 : index
    %c0_117 = arith.constant 0 : index
    %321 = vector.load %arg6[%c0_116, %c0_117] : memref<8x128xf32, #tpu.memory_space<vmem>>, vector<8x128xf32>
    tpu.vector_store %arg6[%c0_116, %c0_117], %318 {strides = array<i32>} : memref<8x128xf32, #tpu.memory_space<vmem>>, vector<8x128xf32>,
    return
  }
  func.func @transform_0(%arg0: i32, %arg1: i32) -> (i32, i32, i32) {
    %c0_i32 = arith.constant 0 : i32
    %c0_i32_0 = arith.constant 0 : i32
    return %arg1, %arg0, %c0_i32 : i32, i32, i32
  }
  func.func @transform_1(%arg0: i32, %arg1: i32) -> (i32, i32) {
    %c0_i32 = arith.constant 0 : i32
    %c0_i32_0 = arith.constant 0 : i32
    %c0_i32_1 = arith.constant 0 : i32
    return %c0_i32, %c0_i32_0 : i32, i32
  }
  func.func @transform_2(%arg0: i32, %arg1: i32) -> (i32, i32) {
    %c0_i32 = arith.constant 0 : i32
    %c0_i32_0 = arith.constant 0 : i32
    %c0_i32_1 = arith.constant 0 : i32
    return %c0_i32, %c0_i32_0 : i32, i32
  }
  func.func @transform_3(%arg0: i32, %arg1: i32) -> (i32, i32) {
    %c0_i32 = arith.constant 0 : i32
    %c0_i32_0 = arith.constant 0 : i32
    %c0_i32_1 = arith.constant 0 : i32
    return %c0_i32, %c0_i32_0 : i32, i32
  }
  func.func @transform_4(%arg0: i32, %arg1: i32) -> (i32, i32) {
    %c0_i32 = arith.constant 0 : i32
    %c0_i32_0 = arith.constant 0 : i32
    return %arg0, %c0_i32 : i32, i32
  }
}

</mosaic_0001>

<bundles_post_ra>
// kernel: tpu_custom_call.1
= control target key start
LH: loop header
LB: loop body
LE: loop exit
PB: predicated region body
PF: predicated region fallthrough
CT: control target
= control target key end

     0   :  { %9 = vsyncpa [#allocation6], 0  ;;  %s2504_s0 = inlined_call_operand.hbm [shape: f32[8,8,128], index: 0, kind: input, shape index: {}]   ;;  %s2505_s1 = inlined_call_operand.hbm [shape: bf16[128,512], index: 1, kind: input, shape index: {}]   ;;  %s2506_s2 = inlined_call_operand.hbm [shape: bf16[128,512], index: 2, kind: input, shape index: {}]   ;;  %s2507_s3 = inlined_call_operand.vmem [shape: f32[1,512], index: 3, kind: input, shape index: {}]   ;;  %s2508_s4 = inlined_call_operand.hbm [shape: f32[8,128], index: 4, kind: output, shape index: {}]  }
   0x1   :  { %10 = vsyncpa [#allocation9], 0 }
   0x2   :  { %11 = vsyncpa [#allocation7], 0  ;;  %s1954_s15 = smov [#allocation8]  }
   0x3   :  { %s29_s16 = sshll.u32 %s1954_s15, 4  ;;  %s30_s16 = int_to_ptr.vmem [resolvable:$true] %s29_s16 }
   0x4   :  { %s1876_s17 = scalar_lea.vmem %s30_s16, 4096  ;;  %p1881_p1 = scmp.lt.s32.totalorder %s30_s16, %s30_s16 }
   0x5   :  { %p1877_p0 = scmp.ne.s32.totalorder %s30_s16, %s1876_s17  ;;  %p1882_p2 = scmp.lt.s32.totalorder %s1876_s17, %s1876_s17 }
   0x7   :  { %p1883_p3 = por %p1882_p2, %p1881_p1 }
   0x9   :  { %p1884_p4 = pnand %p1883_p3, %p1877_p0 }
   0xb   :  { %1887 = shalt.err (!%p1884_p4)
}
   0xc   :  { %s1955_s18 = smov 256   ;;  %s1956_s19 = smov 16  }
   0xd   :  { %35 = dma.hbm_to_vmem [thread:$0]  %s2505_s1, 4096, %s30_s16, [#allocation9], %s1955_s18, %s1955_s18, %s1956_s19  }
   0xe   :  { %s1957_s22 = smov [#allocation5]  }
   0xf   :  { %s17_s23 = sshll.u32 %s1957_s22, 4  ;;  %s18_s23 = int_to_ptr.vmem [resolvable:$true] %s17_s23 }
  0x10   :  { %s1896_s24 = scalar_lea.vmem %s18_s23, 1024  ;;  %p1901_p6 = scmp.lt.s32.totalorder %s18_s23, %s18_s23 }
  0x11   :  { %p1897_p5 = scmp.ne.s32.totalorder %s18_s23, %s1896_s24  ;;  %p1902_p7 = scmp.lt.s32.totalorder %s1896_s24, %s1896_s24 }
  0x13   :  { %p1903_p8 = por %p1902_p7, %p1901_p6 }
  0x15   :  { %p1904_p9 = pnand %p1903_p8, %p1897_p5 }
  0x17   :  { %1907 = shalt.err (!%p1904_p9)
}
  0x18   :  { %s1958_s25 = smov 128   ;;  %s1959_s26 = smov 8  }
  0x19   :  { %23 = dma.hbm_to_vmem [thread:$0]  %s2504_s0, 1024, %s18_s23, [#allocation6], %s1958_s25, %s1958_s25, %s1959_s26  }
  0x1a   :  { %s1960_s29 = smov [#allocation10]  }
  0x1b   :  { %s41_s30 = sshll.u32 %s1960_s29, 4  ;;  %s42_s30 = int_to_ptr.vmem [resolvable:$true] %s41_s30 }
  0x1c   :  { %s1916_s1 = scalar_lea.vmem %s42_s30, 4096  ;;  %p1921_p11 = scmp.lt.s32.totalorder %s42_s30, %s42_s30 }
  0x1d   :  { %p1917_p10 = scmp.ne.s32.totalorder %s42_s30, %s1916_s1  ;;  %p1922_p12 = scmp.lt.s32.totalorder %s1916_s1, %s1916_s1 }
  0x1f   :  { %p1923_p13 = por %p1922_p12, %p1921_p11 }
  0x21   :  { %p1924_p0 = pnand %p1923_p13, %p1917_p10 }
  0x23   :  { %1927 = shalt.err (!%p1924_p0)
}
  0x24   :  { %47 = dma.hbm_to_vmem [thread:$0]  %s2506_s2, 4096, %s42_s30, [#allocation9], %s1955_s18, %s1955_s18, %s1956_s19  }
  0x25   :  { %1948 = dma.done.wait [#allocation6], 1024  }
  0x26   :  { %1949 = vsyncadd [#allocation6], 4294966272 }
  0x27   :  { %1950 = dma.done.wait [#allocation9], 8192  }
  0x28   :  { %1951 = vsyncadd [#allocation9], 4294959104  ;;  %v2509_v0 = vmov 0   ;;  %v1660_v1 = vld [vmem:[#allocation8 + $0xe4] ss:$16 sps:$4 sm:$0xff]   ;;  %v67_v34 = vld [vmem:[#allocation5 + $0x8] sm:$0xff] }
  0x29   :  { %324 = vmatprep.mubr.bf16.mxu0 %v2509_v0  ;;  %397 = vmatprep.mubr.bf16.mxu1 %v2509_v0  ;;  %v1662_v2 = vld [vmem:[#allocation8 + $0xec] ss:$16 sps:$4 sm:$0xff]   ;;  %v1664_v3 = vld [vmem:[#allocation8 + $0xe0] ss:$16 sps:$4 sm:$0xff]   ;;  %v1665_v4 = vld [vmem:[#allocation8 + $0xe8] ss:$16 sps:$4 sm:$0xff]  }
  0x2a   :  { %292 = vmatprep.subr.bf16.mxu0 %v1660_v1  ;;  %365 = vmatprep.subr.bf16.mxu1 %v1662_v2  ;;  %v1666_v5 = vld [vmem:[#allocation8 + $0xc4] ss:$16 sps:$4 sm:$0xff]   ;;  %v1668_v6 = vld [vmem:[#allocation8 + $0xcc] ss:$16 sps:$4 sm:$0xff]   ;;  %v1670_v7 = vld [vmem:[#allocation8 + $0xc0] ss:$16 sps:$4 sm:$0xff]  }
  0x2b   :  { %293 = vmatpush1.bf16.msra.mxu0 %v1664_v3  ;;  %366 = vmatpush1.bf16.msra.mxu1 %v1665_v4  ;;  %v1671_v8 = vld [vmem:[#allocation8 + $0xc8] ss:$16 sps:$4 sm:$0xff]   ;;  %v1672_v9 = vld [vmem:[#allocation8 + $0xa4] ss:$16 sps:$4 sm:$0xff]   ;;  %v1674_v10 = vld [vmem:[#allocation8 + $0xac] ss:$16 sps:$4 sm:$0xff]  }
  0x2c   :  { %294 = vmatprep.subr.bf16.mxu0 %v1666_v5  ;;  %367 = vmatprep.subr.bf16.mxu1 %v1668_v6  ;;  %v1676_v11 = vld [vmem:[#allocation8 + $0xa0] ss:$16 sps:$4 sm:$0xff]   ;;  %v1677_v12 = vld [vmem:[#allocation8 + $0xa8] ss:$16 sps:$4 sm:$0xff]   ;;  %v1678_v13 = vld [vmem:[#allocation8 + $0x84] ss:$16 sps:$4 sm:$0xff]  }
  0x2d   :  { %v1680_v14 = vld [vmem:[#allocation8 + $0x8c] ss:$16 sps:$4 sm:$0xff]   ;;  %v1682_v15 = vld [vmem:[#allocation8 + $0x80] ss:$16 sps:$4 sm:$0xff]   ;;  %v1683_v16 = vld [vmem:[#allocation8 + $0x88] ss:$16 sps:$4 sm:$0xff]  }
  0x2e   :  { %v1684_v17 = vld [vmem:[#allocation8 + $0x64] ss:$16 sps:$4 sm:$0xff]   ;;  %v1686_v18 = vld [vmem:[#allocation8 + $0x6c] ss:$16 sps:$4 sm:$0xff]   ;;  %v1688_v19 = vld [vmem:[#allocation8 + $0x60] ss:$16 sps:$4 sm:$0xff]  }
  0x2f   :  { %295 = vmatpush1.bf16.msra.mxu0 %v1670_v7  ;;  %368 = vmatpush1.bf16.msra.mxu1 %v1671_v8  ;;  %v1689_v20 = vld [vmem:[#allocation8 + $0x68] ss:$16 sps:$4 sm:$0xff]   ;;  %v1690_v21 = vld [vmem:[#allocation8 + $0x44] ss:$16 sps:$4 sm:$0xff]   ;;  %v1692_v22 = vld [vmem:[#allocation8 + $0x4c] ss:$16 sps:$4 sm:$0xff]  }
  0x30   :  { %296 = vmatprep.subr.bf16.mxu0 %v1672_v9  ;;  %369 = vmatprep.subr.bf16.mxu1 %v1674_v10  ;;  %v1694_v23 = vld [vmem:[#allocation8 + $0x40] ss:$16 sps:$4 sm:$0xff]   ;;  %v1695_v24 = vld [vmem:[#allocation8 + $0x48] ss:$16 sps:$4 sm:$0xff]   ;;  %v1696_v25 = vld [vmem:[#allocation8 + $0x24] ss:$16 sps:$4 sm:$0xff]  }
  0x31   :  { %v1698_v26 = vld [vmem:[#allocation8 + $0x2c] ss:$16 sps:$4 sm:$0xff]   ;;  %v1700_v27 = vld [vmem:[#allocation8 + $0x20] ss:$16 sps:$4 sm:$0xff]   ;;  %v1701_v28 = vld [vmem:[#allocation8 + $0x28] ss:$16 sps:$4 sm:$0xff]  }
  0x32   :  { %v1702_v29 = vld [vmem:[#allocation8 + $0x4] ss:$16 sps:$4 sm:$0xff]   ;;  %v1704_v30 = vld [vmem:[#allocation8 + $0xc] ss:$16 sps:$4 sm:$0xff]   ;;  %v1706_v31 = vld [vmem:[#allocation8] ss:$16 sps:$4 sm:$0xff]  }
  0x33   :  { %297 = vmatpush1.bf16.msra.mxu0 %v1676_v11  ;;  %370 = vmatpush1.bf16.msra.mxu1 %v1677_v12  ;;  %v1707_v32 = vld [vmem:[#allocation8 + $0x8] ss:$16 sps:$4 sm:$0xff]   ;;  %v66_v33 = vld [vmem:[#allocation5] sm:$0xff]  ;;  %v2002_v36 = vld [vmem:[#allocation10 + $0xec] ss:$16 sps:$4 sm:$0xff]  }
  0x34   :  { %298 = vmatprep.subr.bf16.mxu0 %v1678_v13  ;;  %371 = vmatprep.subr.bf16.mxu1 %v1680_v14  ;;  %v2000_v35 = vld [vmem:[#allocation10 + $0xe4] ss:$16 sps:$4 sm:$0xff]   ;;  %v74_v37 = vpack.c.bf16 %v67_v34, %v66_v33  ;;  %v2004_v38 = vld [vmem:[#allocation10 + $0xe0] ss:$16 sps:$4 sm:$0xff]   ;;  %v2006_v39 = vld [vmem:[#allocation10 + $0xe8] ss:$16 sps:$4 sm:$0xff]  }
  0x35   :  { %v2010_v40 = vld [vmem:[#allocation10 + $0xc4] ss:$16 sps:$4 sm:$0xff]   ;;  %v2012_v41 = vld [vmem:[#allocation10 + $0xcc] ss:$16 sps:$4 sm:$0xff]   ;;  %v2014_v42 = vld [vmem:[#allocation10 + $0xc0] ss:$16 sps:$4 sm:$0xff]  }
  0x36   :  { %v2016_v43 = vld [vmem:[#allocation10 + $0xc8] ss:$16 sps:$4 sm:$0xff]   ;;  %v68_v44 = vld [vmem:[#allocation5 + $0x10] sm:$0xff]  ;;  %v2024_v47 = vld [vmem:[#allocation10 + $0xac] ss:$16 sps:$4 sm:$0xff]   ;;  %v1962_v14 = vmov 0.0|0.0  }
  0x37   :  { %299 = vmatpush1.bf16.msra.mxu0 %v1682_v15  ;;  %372 = vmatpush1.bf16.msra.mxu1 %v1683_v16  ;;  %v69_v45 = vld [vmem:[#allocation5 + $0x18] sm:$0xff]  ;;  %v2020_v46 = vld [vmem:[#allocation10 + $0xa4] ss:$16 sps:$4 sm:$0xff]   ;;  %v2028_v49 = vld [vmem:[#allocation10 + $0xa0] ss:$16 sps:$4 sm:$0xff]   ;;  %v112_v15 = vlaneseq }
  0x38   :  { %300 = vmatprep.subr.bf16.mxu0 %v1684_v17  ;;  %373 = vmatprep.subr.bf16.mxu1 %v1686_v18  ;;  %v75_v48 = vpack.c.bf16 %v69_v45, %v68_v44  ;;  %v2030_v50 = vld [vmem:[#allocation10 + $0xa8] ss:$16 sps:$4 sm:$0xff]   ;;  %v2034_v51 = vld [vmem:[#allocation10 + $0x84] ss:$16 sps:$4 sm:$0xff]   ;;  %v2038_v52 = vld [vmem:[#allocation10 + $0x8c] ss:$16 sps:$4 sm:$0xff]  }
  0x39   :  { %v2040_v53 = vld [vmem:[#allocation10 + $0x80] ss:$16 sps:$4 sm:$0xff]   ;;  %v2042_v54 = vld [vmem:[#allocation10 + $0x88] ss:$16 sps:$4 sm:$0xff]   ;;  %v2048_v57 = vld [vmem:[#allocation10 + $0x64] ss:$16 sps:$4 sm:$0xff]  }
  0x3a   :  { %v70_v55 = vld [vmem:[#allocation5 + $0x20] sm:$0xff]  ;;  %v71_v56 = vld [vmem:[#allocation5 + $0x28] sm:$0xff]  ;;  %v72_v3 = vld [vmem:[#allocation5 + $0x30] sm:$0xff]  ;;  %v113_v16 = vshrl.u32 %v112_v15, 7 }
  0x3b   :  { %301 = vmatpush1.bf16.msra.mxu0 %v1688_v19  ;;  %374 = vmatpush1.bf16.msra.mxu1 %v1689_v20  ;;  %v2050_v58 = vld [vmem:[#allocation10 + $0x6c] ss:$16 sps:$4 sm:$0xff]   ;;  %v76_v59 = vpack.c.bf16 %v71_v56, %v70_v55  ;;  %v2056_v60 = vld [vmem:[#allocation10 + $0x60] ss:$16 sps:$4 sm:$0xff]   ;;  %v2058_v61 = vld [vmem:[#allocation10 + $0x68] ss:$16 sps:$4 sm:$0xff]  }
  0x3c   :  { %302 = vmatprep.subr.bf16.mxu0 %v1690_v21  ;;  %375 = vmatprep.subr.bf16.mxu1 %v1692_v22  ;;  %v2062_v62 = vld [vmem:[#allocation10 + $0x44] ss:$16 sps:$4 sm:$0xff]   ;;  %v2064_v63 = vld [vmem:[#allocation10 + $0x4c] ss:$16 sps:$4 sm:$0xff]   ;;  %v2066_v1 = vld [vmem:[#allocation10 + $0x40] ss:$16 sps:$4 sm:$0xff]  }
  0x3d   :  { %v2070_v2 = vld [vmem:[#allocation10 + $0x48] ss:$16 sps:$4 sm:$0xff]   ;;  %v2074_v5 = vld [vmem:[#allocation10 + $0x24] ss:$16 sps:$4 sm:$0xff]   ;;  %v2076_v6 = vld [vmem:[#allocation10 + $0x2c] ss:$16 sps:$4 sm:$0xff]  }
  0x3e   :  { %v73_v4 = vld [vmem:[#allocation5 + $0x38] sm:$0xff]  ;;  %v2082_v8 = vld [vmem:[#allocation10 + $0x20] ss:$16 sps:$4 sm:$0xff]   ;;  %v2088_v10 = vld [vmem:[#allocation10 + $0x4] ss:$16 sps:$4 sm:$0xff]   ;;  %v122_v17 = vsub.s32 2, %v113_v16 }
  0x3f   :  { %303 = vmatpush1.bf16.msra.mxu0 %v1694_v23  ;;  %376 = vmatpush1.bf16.msra.mxu1 %v1695_v24  ;;  %v77_v7 = vpack.c.bf16 %v73_v4, %v72_v3  ;;  %v2084_v9 = vld [vmem:[#allocation10 + $0x28] ss:$16 sps:$4 sm:$0xff]   ;;  %v2090_v11 = vld [vmem:[#allocation10 + $0xc] ss:$16 sps:$4 sm:$0xff]   ;;  %v2094_v12 = vld [vmem:[#allocation10] ss:$16 sps:$4 sm:$0xff]  }
  0x40   :  { %304 = vmatprep.subr.bf16.mxu0 %v1696_v25  ;;  %377 = vmatprep.subr.bf16.mxu1 %v1698_v26  ;;  %v2096_v13 = vld [vmem:[#allocation10 + $0x8] ss:$16 sps:$4 sm:$0xff]   ;;  %v114_v18 = vsub.s32 0, %v113_v16  ;;  %v126_v19 = vsub.s32 3, %v113_v16  ;;  %v110_v20 = vld [vmem:[%s2507_s3] sm:$0xf] }
  0x41   :  { %v2147_v23 = vrot.slane %v110_v20, %v122_v17  ;;  %v118_v24 = vsub.s32 1, %v113_v16  ;;  %s1963_s3 = smov [#allocation11]  }
  0x42   :  { %s1569_s7 = sshll.u32 %s1963_s3, 4  ;;  %s1570_s7 = int_to_ptr.vmem [resolvable:$true] %s1569_s7 }
  0x43   :  { %305 = vmatpush1.bf16.msra.mxu0 %v1700_v27  ;;  %378 = vmatpush1.bf16.msra.mxu1 %v1701_v28  ;;  %v115_v27 = vrot.slane %v110_v20, %v114_v18  ;;  %v2153_v28 = vrot.slane %v110_v20, %v126_v19  ;;  %s1928_s8 = scalar_lea.vmem %s1570_s7, 128  ;;  %p1933_p2 = scmp.lt.s32.totalorder %s1570_s7, %s1570_s7 }
  0x44   :  { %306 = vmatprep.subr.bf16.mxu0 %v1702_v29  ;;  %379 = vmatprep.subr.bf16.mxu1 %v1704_v30  ;;  %p1929_p1 = scmp.ne.s32.totalorder %s1570_s7, %s1928_s8  ;;  %p1934_p3 = scmp.lt.s32.totalorder %s1928_s8, %s1928_s8 }
  0x46   :  { %p1935_p4 = por %p1934_p3, %p1933_p2 }
  0x47   :  { %307 = vmatpush1.bf16.msra.mxu0 %v1706_v31  ;;  %380 = vmatpush1.bf16.msra.mxu1 %v1707_v32  ;;  %v119_v31 = vrot.slane %v110_v20, %v118_v24 }
  0x48   :  { %672 = vmatprep.subr.bf16.mxu0 %v2000_v35  ;;  %713 = vmatprep.subr.bf16.mxu1 %v2002_v36  ;;  %p1936_p5 = pnand %p1935_p4, %p1929_p1 }
  0x4a   :  { %325 = vmatmul.mubr.bf16.vlgmr.msra.gmra.mxu0 %v74_v37  ;;  %398 = vmatmul.mubr.bf16.vlgmr.msra.gmra.mxu1 %v74_v37 }
  0x4b   :  { %673 = vmatpush1.bf16.msra.mxu0 %v2004_v38  ;;  %714 = vmatpush1.bf16.msra.mxu1 %v2006_v39 }
  0x4c   :  { %674 = vmatprep.subr.bf16.mxu0 %v2010_v40  ;;  %715 = vmatprep.subr.bf16.mxu1 %v2012_v41 }
  0x4d   :  { %334 = vmatprep.mubr.bf16.mxu0 %v2509_v0  ;;  %407 = vmatprep.mubr.bf16.mxu1 %v2509_v0 }
  0x4f   :  { %675 = vmatpush1.bf16.msra.mxu0 %v2014_v42  ;;  %716 = vmatpush1.bf16.msra.mxu1 %v2016_v43 }
  0x50   :  { %676 = vmatprep.subr.bf16.mxu0 %v2020_v46  ;;  %717 = vmatprep.subr.bf16.mxu1 %v2024_v47 }
  0x52   :  { %335 = vmatmul.mubr.bf16.gmra.mxu0 %v75_v48  ;;  %408 = vmatmul.mubr.bf16.gmra.mxu1 %v75_v48 }
  0x53   :  { %677 = vmatpush1.bf16.msra.mxu0 %v2028_v49  ;;  %718 = vmatpush1.bf16.msra.mxu1 %v2030_v50 }
  0x54   :  { %678 = vmatprep.subr.bf16.mxu0 %v2034_v51  ;;  %719 = vmatprep.subr.bf16.mxu1 %v2038_v52 }
  0x55   :  { %344 = vmatprep.mubr.bf16.mxu0 %v2509_v0  ;;  %417 = vmatprep.mubr.bf16.mxu1 %v2509_v0 }
  0x57   :  { %679 = vmatpush1.bf16.msra.mxu0 %v2040_v53  ;;  %720 = vmatpush1.bf16.msra.mxu1 %v2042_v54 }
  0x58   :  { %680 = vmatprep.subr.bf16.mxu0 %v2048_v57  ;;  %721 = vmatprep.subr.bf16.mxu1 %v2050_v58 }
  0x5a   :  { %345 = vmatmul.mubr.bf16.gmra.mxu0 %v76_v59  ;;  %418 = vmatmul.mubr.bf16.gmra.mxu1 %v76_v59 }
  0x5b   :  { %681 = vmatpush1.bf16.msra.mxu0 %v2056_v60  ;;  %722 = vmatpush1.bf16.msra.mxu1 %v2058_v61 }
  0x5c   :  { %682 = vmatprep.subr.bf16.mxu0 %v2062_v62  ;;  %723 = vmatprep.subr.bf16.mxu1 %v2064_v63 }
  0x5d   :  { %354 = vmatprep.mubr.bf16.mxu0 %v2509_v0  ;;  %427 = vmatprep.mubr.bf16.mxu1 %v2509_v0 }
  0x5f   :  { %683 = vmatpush1.bf16.msra.mxu0 %v2066_v1  ;;  %724 = vmatpush1.bf16.msra.mxu1 %v2070_v2 }
  0x60   :  { %684 = vmatprep.subr.bf16.mxu0 %v2074_v5  ;;  %725 = vmatprep.subr.bf16.mxu1 %v2076_v6 }
  0x62   :  { %355 = vmatmul.mubr.bf16.gmra.mxu0 %v77_v7  ;;  %428 = vmatmul.mubr.bf16.gmra.mxu1 %v77_v7 }
  0x63   :  { %685 = vmatpush1.bf16.msra.mxu0 %v2082_v8  ;;  %726 = vmatpush1.bf16.msra.mxu1 %v2084_v9 }
  0x64   :  { %686 = vmatprep.subr.bf16.mxu0 %v2088_v10  ;;  %727 = vmatprep.subr.bf16.mxu1 %v2090_v11 }
  0x65   :  { %704 = vmatprep.mubr.bf16.mxu0 %v2509_v0  ;;  %745 = vmatprep.mubr.bf16.mxu1 %v2509_v0 }
  0x67   :  { %687 = vmatpush1.bf16.msra.mxu0 %v2094_v12  ;;  %728 = vmatpush1.bf16.msra.mxu1 %v2096_v13 }
  0x68   :  { %784 = vmatprep.subr.bf16.mxu0 %v2000_v35  ;;  %825 = vmatprep.subr.bf16.mxu1 %v2002_v36 }
  0x6a   :  { %705 = vmatmul.mubr.bf16.vlgmr.msra.gmra.mxu0 %v1962_v14  ;;  %746 = vmatmul.mubr.bf16.vlgmr.msra.gmra.mxu1 %v1962_v14 }
  0x6b   :  { %785 = vmatpush1.bf16.msra.mxu0 %v2004_v38  ;;  %826 = vmatpush1.bf16.msra.mxu1 %v2006_v39 }
  0x6c   :  { %786 = vmatprep.subr.bf16.mxu0 %v2010_v40  ;;  %827 = vmatprep.subr.bf16.mxu1 %v2012_v41 }
  0x6d   :  { %816 = vmatprep.mubr.bf16.mxu0 %v2509_v0  ;;  %857 = vmatprep.mubr.bf16.mxu1 %v2509_v0 }
  0x6f   :  { %787 = vmatpush1.bf16.msra.mxu0 %v2014_v42  ;;  %828 = vmatpush1.bf16.msra.mxu1 %v2016_v43 }
  0x70   :  { %788 = vmatprep.subr.bf16.mxu0 %v2020_v46  ;;  %829 = vmatprep.subr.bf16.mxu1 %v2024_v47 }
  0x73   :  { %789 = vmatpush1.bf16.msra.mxu0 %v2028_v49  ;;  %830 = vmatpush1.bf16.msra.mxu1 %v2030_v50 }
  0x74   :  { %790 = vmatprep.subr.bf16.mxu0 %v2034_v51  ;;  %831 = vmatprep.subr.bf16.mxu1 %v2038_v52 }
  0x77   :  { %791 = vmatpush1.bf16.msra.mxu0 %v2040_v53  ;;  %832 = vmatpush1.bf16.msra.mxu1 %v2042_v54 }
  0x78   :  { %792 = vmatprep.subr.bf16.mxu0 %v2048_v57  ;;  %833 = vmatprep.subr.bf16.mxu1 %v2050_v58 }
  0x7b   :  { %793 = vmatpush1.bf16.msra.mxu0 %v2056_v60  ;;  %834 = vmatpush1.bf16.msra.mxu1 %v2058_v61 }
  0x7c   :  { %794 = vmatprep.subr.bf16.mxu0 %v2062_v62  ;;  %835 = vmatprep.subr.bf16.mxu1 %v2064_v63 }
  0x7f   :  { %795 = vmatpush1.bf16.msra.mxu0 %v2066_v1  ;;  %836 = vmatpush1.bf16.msra.mxu1 %v2070_v2 }
  0x80   :  { %796 = vmatprep.subr.bf16.mxu0 %v2074_v5  ;;  %837 = vmatprep.subr.bf16.mxu1 %v2076_v6 }
  0x83   :  { %797 = vmatpush1.bf16.msra.mxu0 %v2082_v8  ;;  %838 = vmatpush1.bf16.msra.mxu1 %v2084_v9 }
  0x84   :  { %798 = vmatprep.subr.bf16.mxu0 %v2088_v10  ;;  %839 = vmatprep.subr.bf16.mxu1 %v2090_v11 }
  0x87   :  { %799 = vmatpush1.bf16.msra.mxu0 %v2094_v12  ;;  %840 = vmatpush1.bf16.msra.mxu1 %v2096_v13 }
  0x88   :  { %896 = vmatprep.subr.bf16.mxu0 %v2000_v35  ;;  %937 = vmatprep.subr.bf16.mxu1 %v2002_v36 }
 0x10a   :  { %v2143_v21 = vpop.f32.mrf.mxu0  ;;  %v2145_v22 = vpop.f32.mrf.mxu1 }
 0x10c   :  { %v2149_v25 = vpop.f32.mrf.mxu0  ;;  %v2151_v26 = vpop.f32.mrf.mxu1 }
 0x10e   :  { %v330_v29 = vpop.f32.mrf.mxu0  ;;  %v403_v30 = vpop.f32.mrf.mxu1 }
 0x10f   :  { %v2155_v32 = vadd.f32 %v330_v29, %v115_v27  ;;  %v2158_v33 = vadd.f32 %v403_v30, %v2147_v23 }
 0x110   :  { %v332_v34 = vpop.f32.mrf.mxu0  ;;  %v405_v37 = vpop.f32.mrf.mxu1 }
 0x111   :  { %v2160_v44 = vadd.f32 %v332_v34, %v119_v31  ;;  %v2163_v45 = vadd.f32 %v405_v37, %v2153_v28 }
 0x112   :  { %v336_v48 = vpop.f32.mrf.mxu0  ;;  %v409_v55 = vpop.f32.mrf.mxu1 }
 0x113   :  { %v2165_v56 = vadd.f32 %v336_v48, %v115_v27  ;;  %v2168_v59 = vadd.f32 %v409_v55, %v2147_v23 }
 0x114   :  { %v338_v3 = vpop.f32.mrf.mxu0  ;;  %v411_v4 = vpop.f32.mrf.mxu1 }
 0x115   :  { %v2170_v7 = vadd.f32 %v338_v3, %v119_v31  ;;  %v2173_v14 = vadd.f32 %v411_v4, %v2153_v28 }
 0x116   :  { %v340_v15 = vpop.f32.mrf.mxu0  ;;  %v413_v16 = vpop.f32.mrf.mxu1 }
 0x117   :  { %v2175_v17 = vadd.f32 %v340_v15, %v115_v27  ;;  %v2178_v18 = vadd.f32 %v413_v16, %v2147_v23 }
 0x118   :  { %v342_v19 = vpop.f32.mrf.mxu0  ;;  %v415_v20 = vpop.f32.mrf.mxu1 }
 0x119   :  { %2511 = vst [vmem:[#allocation15_spill] sm:$0xff] %v2175_v17  ;;  %2512 = vst [vmem:[#allocation16_spill] sm:$0xff] %v2178_v18  ;;  %v2180_v24 = vadd.f32 %v342_v19, %v119_v31  ;;  %v2183_v29 = vadd.f32 %v415_v20, %v2153_v28  ;;  %v400_v17 = vadd.f32 %v2145_v22, %v2147_v23 }
 0x11a   :  { %v346_v30 = vpop.f32.mrf.mxu0  ;;  %v419_v34 = vpop.f32.mrf.mxu1 }
 0x11b   :  { %2513 = vst [vmem:[#allocation17_spill] sm:$0xff] %v2180_v24  ;;  %2514 = vst [vmem:[#allocation18_spill] sm:$0xff] %v2183_v29  ;;  %v2185_v37 = vadd.f32 %v346_v30, %v115_v27  ;;  %v2188_v48 = vadd.f32 %v419_v34, %v2147_v23 }
 0x11c   :  { %v348_v55 = vpop.f32.mrf.mxu0  ;;  %v421_v3 = vpop.f32.mrf.mxu1 }
 0x11d   :  { %2515 = vst [vmem:[#allocation19_spill] sm:$0xff] %v2185_v37  ;;  %2516 = vst [vmem:[#allocation20_spill] sm:$0xff] %v2188_v48  ;;  %v2190_v4 = vadd.f32 %v348_v55, %v119_v31  ;;  %v2193_v15 = vadd.f32 %v421_v3, %v2153_v28 }
 0x11e   :  { %v350_v16 = vpop.f32.mrf.mxu0  ;;  %v423_v19 = vpop.f32.mrf.mxu1 }
 0x11f   :  { %2517 = vst [vmem:[#allocation21_spill] sm:$0xff] %v2190_v4  ;;  %2518 = vst [vmem:[#allocation22_spill] sm:$0xff] %v2193_v15  ;;  %v2195_v0 = vadd.f32 %v350_v16, %v115_v27  ;;  %v2198_v20 = vadd.f32 %v423_v19, %v2147_v23 }
 0x120   :  { %v352_v29 = vpop.f32.mrf.mxu0  ;;  %v425_v30 = vpop.f32.mrf.mxu1 }
 0x121   :  { %2519 = vst [vmem:[#allocation23_spill] sm:$0xff] %v2195_v0  ;;  %2520 = vst [vmem:[#allocation24_spill] sm:$0xff] %v2198_v20  ;;  %v2200_v37 = vadd.f32 %v352_v29, %v119_v31  ;;  %v2203_v34 = vadd.f32 %v425_v30, %v2153_v28 }
 0x122   :  { %v356_v48 = vpop.f32.mrf.mxu0  ;;  %v429_v55 = vpop.f32.mrf.mxu1 }
 0x123   :  { %2521 = vst [vmem:[#allocation25_spill] sm:$0xff] %v2200_v37  ;;  %2522 = vst [vmem:[#allocation26_spill] sm:$0xff] %v2203_v34  ;;  %v2205_v4 = vadd.f32 %v356_v48, %v115_v27  ;;  %v2208_v3 = vadd.f32 %v429_v55, %v2147_v23 }
 0x124   :  { %v358_v15 = vpop.f32.mrf.mxu0  ;;  %v431_v16 = vpop.f32.mrf.mxu1 }
 0x125   :  { %2523 = vst [vmem:[#allocation27_spill] sm:$0xff] %v2205_v4  ;;  %2524 = vst [vmem:[#allocation28_spill] sm:$0xff] %v2208_v3  ;;  %v2210_v0 = vadd.f32 %v358_v15, %v119_v31  ;;  %v2213_v19 = vadd.f32 %v431_v16, %v2153_v28  ;;  %v327_v4 = vadd.f32 %v2143_v21, %v115_v27 }
 0x126   :  { %v360_v20 = vpop.f32.mrf.mxu0  ;;  %v433_v29 = vpop.f32.mrf.mxu1  ;;  %v329_v16 = vadd.f32 %v2149_v25, %v119_v31 }
 0x127   :  { %2525 = vst [vmem:[#allocation29_spill] sm:$0xff] %v2210_v0  ;;  %2526 = vst [vmem:[#allocation30_spill] sm:$0xff] %v2213_v19  ;;  %v2215_v37 = vadd.f32 %v360_v20, %v115_v27  ;;  %v2218_v30 = vadd.f32 %v433_v29, %v2147_v23 }
 0x128   :  { %v362_v34 = vpop.f32.mrf.mxu0  ;;  %v435_v48 = vpop.f32.mrf.mxu1 }
 0x129   :  { %2527 = vst [vmem:[#allocation31_spill] sm:$0xff] %v2215_v37  ;;  %2528 = vst [vmem:[#allocation32_spill] sm:$0xff] %v2218_v30  ;;  %v2221_v55 = vadd.f32 %v362_v34, %v119_v31  ;;  %v2224_v3 = vadd.f32 %v435_v48, %v2153_v28 }
 0x12a   :  { %v706_v15 = vpop.f32.mrf.mxu0  ;;  %v747_v0 = vpop.f32.mrf.mxu1 }
 0x12b   :  { %2529 = vst [vmem:[#allocation33_spill] sm:$0xff] %v2224_v3  ;;  %v754_v19 = vadd.f32 %v706_v15, %v327_v4  ;;  %v756_v48 = vadd.f32 %v747_v0, %v400_v17  ;;  %v402_v3 = vadd.f32 %v2151_v26, %v2153_v28 }
 0x12c   :  { %v708_v18 = vpop.f32.mrf.mxu0  ;;  %v749_v20 = vpop.f32.mrf.mxu1 }
 0x12d   :  { %v758_v37 = vmul.f32 0.5, %v754_v19  ;;  %v755_v24 = vadd.f32 %v708_v18, %v329_v16  ;;  %v757_v25 = vadd.f32 %v749_v20, %v402_v3 }
 0x12e   :  { %v710_v29 = vpop.f32.mrf.mxu0  ;;  %v751_v30 = vpop.f32.mrf.mxu1 }
 0x12f   :  { %1756 = vtanh.f32 %v758_v37  ;;  %v762_v21 = vmul.f32 0.5, %v755_v24  ;;  %v767_v31 = vmul.f32 0.5, %v757_v25  ;;  %v2530_v29 = vmov 0  }
 0x130   :  { %v711_v27 = vpop.f32.mrf.mxu0  ;;  %v752_v34 = vpop.f32.mrf.mxu1 }
 0x131   :  { %1758 = vtanh.f32 %v762_v21 }
 0x132   :  { %1760 = vtanh.f32 %v756_v48 }
 0x133   :  { %1762 = vtanh.f32 %v767_v31 }
 0x13c   :  { %v1757_v4 = vpop.eup %1756 }
 0x13d   :  { %v760_v19 = vmul.f32 0.5, %v1757_v4 }
 0x13e   :  { %v1759_v18 = vpop.eup %1758 }
 0x13f   :  { %v761_v15 = vadd.f32 0.5, %v760_v19  ;;  %v764_v30 = vmul.f32 0.5, %v1759_v18  ;;  %v1761_v22 = vpop.eup %1760 }
 0x140   :  { %v1763_v0 = vpop.eup %1762 }
 0x141   :  { %v765_v16 = vadd.f32 0.5, %v764_v30  ;;  %v772_v24 = vmul.f32 %v1761_v22, %v761_v15  ;;  %v769_v17 = vmul.f32 0.5, %v1763_v0 }
 0x143   :  { %v771_v23 = vmul.f32 0.0, %v765_v16  ;;  %v770_v26 = vadd.f32 0.5, %v769_v17 }
 0x145   :  { %v2231_v37 = vadd.f32 %v772_v24, %v771_v23 }
 0x147   :  { %1764 = vtanh.f32 %v2231_v37 }
 0x154   :  { %v1765_v28 = vpop.eup %1764 }
 0x155   :  { %v775_v3 = vmul.f32 %v1765_v28, %v770_v26 }
 0x157   :  { %v783_v20 = vpack.c.bf16 %v775_v3, %v775_v3 }
 0x159   :  { %817 = vmatmul.mubr.bf16.vlgmr.msra.gmra.mxu0 %v783_v20  ;;  %858 = vmatmul.mubr.bf16.vlgmr.msra.gmra.mxu1 %v783_v20 }
 0x15a   :  { %897 = vmatpush1.bf16.msra.mxu0 %v2004_v38  ;;  %938 = vmatpush1.bf16.msra.mxu1 %v2006_v39 }
 0x15b   :  { %898 = vmatprep.subr.bf16.mxu0 %v2010_v40  ;;  %939 = vmatprep.subr.bf16.mxu1 %v2012_v41 }
 0x15c   :  { %928 = vmatprep.mubr.bf16.mxu0 %v2530_v29  ;;  %969 = vmatprep.mubr.bf16.mxu1 %v2530_v29 }
 0x15e   :  { %899 = vmatpush1.bf16.msra.mxu0 %v2014_v42  ;;  %940 = vmatpush1.bf16.msra.mxu1 %v2016_v43 }
 0x15f   :  { %900 = vmatprep.subr.bf16.mxu0 %v2020_v46  ;;  %941 = vmatprep.subr.bf16.mxu1 %v2024_v47 }
 0x162   :  { %901 = vmatpush1.bf16.msra.mxu0 %v2028_v49  ;;  %942 = vmatpush1.bf16.msra.mxu1 %v2030_v50 }
 0x163   :  { %902 = vmatprep.subr.bf16.mxu0 %v2034_v51  ;;  %943 = vmatprep.subr.bf16.mxu1 %v2038_v52 }
 0x166   :  { %903 = vmatpush1.bf16.msra.mxu0 %v2040_v53  ;;  %944 = vmatpush1.bf16.msra.mxu1 %v2042_v54 }
 0x167   :  { %904 = vmatprep.subr.bf16.mxu0 %v2048_v57  ;;  %945 = vmatprep.subr.bf16.mxu1 %v2050_v58 }
 0x16a   :  { %905 = vmatpush1.bf16.msra.mxu0 %v2056_v60  ;;  %946 = vmatpush1.bf16.msra.mxu1 %v2058_v61 }
 0x16b   :  { %906 = vmatprep.subr.bf16.mxu0 %v2062_v62  ;;  %947 = vmatprep.subr.bf16.mxu1 %v2064_v63 }
 0x16e   :  { %907 = vmatpush1.bf16.msra.mxu0 %v2066_v1  ;;  %948 = vmatpush1.bf16.msra.mxu1 %v2070_v2 }
 0x16f   :  { %908 = vmatprep.subr.bf16.mxu0 %v2074_v5  ;;  %949 = vmatprep.subr.bf16.mxu1 %v2076_v6 }
 0x172   :  { %909 = vmatpush1.bf16.msra.mxu0 %v2082_v8  ;;  %950 = vmatpush1.bf16.msra.mxu1 %v2084_v9 }
 0x173   :  { %910 = vmatprep.subr.bf16.mxu0 %v2088_v10  ;;  %951 = vmatprep.subr.bf16.mxu1 %v2090_v11 }
 0x176   :  { %911 = vmatpush1.bf16.msra.mxu0 %v2094_v12  ;;  %952 = vmatpush1.bf16.msra.mxu1 %v2096_v13 }
 0x177   :  { %1008 = vmatprep.subr.bf16.mxu0 %v2000_v35  ;;  %1049 = vmatprep.subr.bf16.mxu1 %v2002_v36 }
 0x219   :  { %v818_v21 = vpop.f32.mrf.mxu0  ;;  %v859_v27 = vpop.f32.mrf.mxu1 }
 0x21a   :  { %v866_v34 = vadd.f32 %v818_v21, %v2155_v32  ;;  %v868_v15 = vadd.f32 %v859_v27, %v2158_v33 }
 0x21b   :  { %v820_v48 = vpop.f32.mrf.mxu0  ;;  %v861_v25 = vpop.f32.mrf.mxu1 }
 0x21c   :  { %v870_v31 = vmul.f32 0.5, %v866_v34  ;;  %v867_v4 = vadd.f32 %v820_v48, %v2160_v44  ;;  %v869_v23 = vadd.f32 %v861_v25, %v2163_v45 }
 0x21d   :  { %v822_v19 = vpop.f32.mrf.mxu0  ;;  %v863_v18 = vpop.f32.mrf.mxu1 }
 0x21e   :  { %1766 = vtanh.f32 %v870_v31  ;;  %v874_v30 = vmul.f32 0.5, %v867_v4  ;;  %v879_v24 = vmul.f32 0.5, %v869_v23 }
 0x21f   :  { %v823_v16 = vpop.f32.mrf.mxu0  ;;  %v864_v22 = vpop.f32.mrf.mxu1 }
 0x220   :  { %1768 = vtanh.f32 %v874_v30 }
 0x221   :  { %1770 = vtanh.f32 %v868_v15 }
 0x222   :  { %1772 = vtanh.f32 %v879_v24 }
 0x22b   :  { %v1767_v0 = vpop.eup %1766 }
 0x22c   :  { %v872_v32 = vmul.f32 0.5, %v1767_v0 }
 0x22d   :  { %v1769_v17 = vpop.eup %1768 }
 0x22e   :  { %v873_v26 = vadd.f32 0.5, %v872_v32  ;;  %v876_v28 = vmul.f32 0.5, %v1769_v17  ;;  %v1771_v44 = vpop.eup %1770 }
 0x22f   :  { %v1773_v27 = vpop.eup %1772 }
 0x230   :  { %v877_v3 = vadd.f32 0.5, %v876_v28  ;;  %v884_v20 = vmul.f32 %v1771_v44, %v873_v26  ;;  %v881_v34 = vmul.f32 0.5, %v1773_v27 }
 0x232   :  { %v883_v21 = vmul.f32 %v877_v3, %v2231_v37  ;;  %v882_v48 = vadd.f32 0.5, %v881_v34 }
 0x234   :  { %v2273_v33 = vadd.f32 %v884_v20, %v883_v21 }
 0x236   :  { %1774 = vtanh.f32 %v2273_v33 }
 0x243   :  { %v1775_v45 = vpop.eup %1774 }
 0x244   :  { %v887_v25 = vmul.f32 %v1775_v45, %v882_v48 }
 0x246   :  { %v895_v31 = vpack.c.bf16 %v887_v25, %v887_v25 }
 0x248   :  { %929 = vmatmul.mubr.bf16.vlgmr.msra.gmra.mxu0 %v895_v31  ;;  %970 = vmatmul.mubr.bf16.vlgmr.msra.gmra.mxu1 %v895_v31 }
 0x249   :  { %1009 = vmatpush1.bf16.msra.mxu0 %v2004_v38  ;;  %1050 = vmatpush1.bf16.msra.mxu1 %v2006_v39 }
 0x24a   :  { %1010 = vmatprep.subr.bf16.mxu0 %v2010_v40  ;;  %1051 = vmatprep.subr.bf16.mxu1 %v2012_v41 }
 0x24b   :  { %1040 = vmatprep.mubr.bf16.mxu0 %v2530_v29  ;;  %1081 = vmatprep.mubr.bf16.mxu1 %v2530_v29 }
 0x24d   :  { %1011 = vmatpush1.bf16.msra.mxu0 %v2014_v42  ;;  %1052 = vmatpush1.bf16.msra.mxu1 %v2016_v43 }
 0x24e   :  { %1012 = vmatprep.subr.bf16.mxu0 %v2020_v46  ;;  %1053 = vmatprep.subr.bf16.mxu1 %v2024_v47 }
 0x251   :  { %1013 = vmatpush1.bf16.msra.mxu0 %v2028_v49  ;;  %1054 = vmatpush1.bf16.msra.mxu1 %v2030_v50 }
 0x252   :  { %1014 = vmatprep.subr.bf16.mxu0 %v2034_v51  ;;  %1055 = vmatprep.subr.bf16.mxu1 %v2038_v52 }
 0x255   :  { %1015 = vmatpush1.bf16.msra.mxu0 %v2040_v53  ;;  %1056 = vmatpush1.bf16.msra.mxu1 %v2042_v54 }
 0x256   :  { %1016 = vmatprep.subr.bf16.mxu0 %v2048_v57  ;;  %1057 = vmatprep.subr.bf16.mxu1 %v2050_v58 }
 0x259   :  { %1017 = vmatpush1.bf16.msra.mxu0 %v2056_v60  ;;  %1058 = vmatpush1.bf16.msra.mxu1 %v2058_v61 }
 0x25a   :  { %1018 = vmatprep.subr.bf16.mxu0 %v2062_v62  ;;  %1059 = vmatprep.subr.bf16.mxu1 %v2064_v63 }
 0x25d   :  { %1019 = vmatpush1.bf16.msra.mxu0 %v2066_v1  ;;  %1060 = vmatpush1.bf16.msra.mxu1 %v2070_v2 }
 0x25e   :  { %1020 = vmatprep.subr.bf16.mxu0 %v2074_v5  ;;  %1061 = vmatprep.subr.bf16.mxu1 %v2076_v6 }
 0x261   :  { %1021 = vmatpush1.bf16.msra.mxu0 %v2082_v8  ;;  %1062 = vmatpush1.bf16.msra.mxu1 %v2084_v9 }
 0x262   :  { %1022 = vmatprep.subr.bf16.mxu0 %v2088_v10  ;;  %1063 = vmatprep.subr.bf16.mxu1 %v2090_v11 }
 0x265   :  { %1023 = vmatpush1.bf16.msra.mxu0 %v2094_v12  ;;  %1064 = vmatpush1.bf16.msra.mxu1 %v2096_v13 }
 0x266   :  { %1120 = vmatprep.subr.bf16.mxu0 %v2000_v35  ;;  %1161 = vmatprep.subr.bf16.mxu1 %v2002_v36 }
 0x308   :  { %v930_v37 = vpop.f32.mrf.mxu0  ;;  %v971_v4 = vpop.f32.mrf.mxu1 }
 0x309   :  { %v978_v19 = vadd.f32 %v930_v37, %v2165_v56  ;;  %v980_v24 = vadd.f32 %v971_v4, %v2168_v59 }
 0x30a   :  { %v932_v18 = vpop.f32.mrf.mxu0  ;;  %v973_v15 = vpop.f32.mrf.mxu1 }
 0x30b   :  { %v982_v30 = vmul.f32 0.5, %v978_v19  ;;  %v979_v16 = vadd.f32 %v932_v18, %v2170_v7  ;;  %v981_v26 = vadd.f32 %v973_v15, %v2173_v14  ;;  %v2531_v18 = vld [vmem:[#allocation15_spill] sm:$0xff] }
 0x30c   :  { %v934_v22 = vpop.f32.mrf.mxu0  ;;  %v975_v23 = vpop.f32.mrf.mxu1 }
 0x30d   :  { %1776 = vtanh.f32 %v982_v30  ;;  %v986_v0 = vmul.f32 0.5, %v979_v16  ;;  %v991_v28 = vmul.f32 0.5, %v981_v26  ;;  %v2532_v23 = vld [vmem:[#allocation17_spill] sm:$0xff] }
 0x30e   :  { %v935_v32 = vpop.f32.mrf.mxu0  ;;  %v976_v17 = vpop.f32.mrf.mxu1 }
 0x30f   :  { %1778 = vtanh.f32 %v986_v0  ;;  %v2533_v17 = vld [vmem:[#allocation16_spill] sm:$0xff] }
 0x310   :  { %1780 = vtanh.f32 %v980_v24 }
 0x311   :  { %1782 = vtanh.f32 %v991_v28 }
 0x31a   :  { %v1777_v44 = vpop.eup %1776 }
 0x31b   :  { %v984_v56 = vmul.f32 0.5, %v1777_v44 }
 0x31c   :  { %v1779_v3 = vpop.eup %1778 }
 0x31d   :  { %v985_v20 = vadd.f32 0.5, %v984_v56  ;;  %v988_v21 = vmul.f32 0.5, %v1779_v3  ;;  %v1781_v7 = vpop.eup %1780 }
 0x31e   :  { %v1783_v45 = vpop.eup %1782 }
 0x31f   :  { %v989_v27 = vadd.f32 0.5, %v988_v21  ;;  %v996_v34 = vmul.f32 %v1781_v7, %v985_v20  ;;  %v993_v25 = vmul.f32 0.5, %v1783_v45 }
 0x321   :  { %v995_v48 = vmul.f32 %v989_v27, %v2273_v33  ;;  %v994_v31 = vadd.f32 0.5, %v993_v25 }
 0x323   :  { %v2315_v59 = vadd.f32 %v996_v34, %v995_v48 }
 0x325   :  { %1784 = vtanh.f32 %v2315_v59 }
 0x332   :  { %v1785_v14 = vpop.eup %1784 }
 0x333   :  { %v999_v37 = vmul.f32 %v1785_v14, %v994_v31 }
 0x335   :  { %v1007_v4 = vpack.c.bf16 %v999_v37, %v999_v37 }
 0x337   :  { %1041 = vmatmul.mubr.bf16.vlgmr.msra.gmra.mxu0 %v1007_v4  ;;  %1082 = vmatmul.mubr.bf16.vlgmr.msra.gmra.mxu1 %v1007_v4 }
 0x338   :  { %1121 = vmatpush1.bf16.msra.mxu0 %v2004_v38  ;;  %1162 = vmatpush1.bf16.msra.mxu1 %v2006_v39 }
 0x339   :  { %1122 = vmatprep.subr.bf16.mxu0 %v2010_v40  ;;  %1163 = vmatprep.subr.bf16.mxu1 %v2012_v41 }
 0x33a   :  { %1152 = vmatprep.mubr.bf16.mxu0 %v2530_v29  ;;  %1193 = vmatprep.mubr.bf16.mxu1 %v2530_v29 }
 0x33c   :  { %1123 = vmatpush1.bf16.msra.mxu0 %v2014_v42  ;;  %1164 = vmatpush1.bf16.msra.mxu1 %v2016_v43 }
 0x33d   :  { %1124 = vmatprep.subr.bf16.mxu0 %v2020_v46  ;;  %1165 = vmatprep.subr.bf16.mxu1 %v2024_v47 }
 0x340   :  { %1125 = vmatpush1.bf16.msra.mxu0 %v2028_v49  ;;  %1166 = vmatpush1.bf16.msra.mxu1 %v2030_v50 }
 0x341   :  { %1126 = vmatprep.subr.bf16.mxu0 %v2034_v51  ;;  %1167 = vmatprep.subr.bf16.mxu1 %v2038_v52 }
 0x344   :  { %1127 = vmatpush1.bf16.msra.mxu0 %v2040_v53  ;;  %1168 = vmatpush1.bf16.msra.mxu1 %v2042_v54 }
 0x345   :  { %1128 = vmatprep.subr.bf16.mxu0 %v2048_v57  ;;  %1169 = vmatprep.subr.bf16.mxu1 %v2050_v58 }
 0x348   :  { %1129 = vmatpush1.bf16.msra.mxu0 %v2056_v60  ;;  %1170 = vmatpush1.bf16.msra.mxu1 %v2058_v61 }
 0x349   :  { %1130 = vmatprep.subr.bf16.mxu0 %v2062_v62  ;;  %1171 = vmatprep.subr.bf16.mxu1 %v2064_v63 }
 0x34c   :  { %1131 = vmatpush1.bf16.msra.mxu0 %v2066_v1  ;;  %1172 = vmatpush1.bf16.msra.mxu1 %v2070_v2 }
 0x34d   :  { %1132 = vmatprep.subr.bf16.mxu0 %v2074_v5  ;;  %1173 = vmatprep.subr.bf16.mxu1 %v2076_v6 }
 0x350   :  { %1133 = vmatpush1.bf16.msra.mxu0 %v2082_v8  ;;  %1174 = vmatpush1.bf16.msra.mxu1 %v2084_v9 }
 0x351   :  { %1134 = vmatprep.subr.bf16.mxu0 %v2088_v10  ;;  %1175 = vmatprep.subr.bf16.mxu1 %v2090_v11 }
 0x354   :  { %1135 = vmatpush1.bf16.msra.mxu0 %v2094_v12  ;;  %1176 = vmatpush1.bf16.msra.mxu1 %v2096_v13 }
 0x355   :  { %1232 = vmatprep.subr.bf16.mxu0 %v2000_v35  ;;  %1273 = vmatprep.subr.bf16.mxu1 %v2002_v36  ;;  %v2534_v35 = vld [vmem:[#allocation18_spill] sm:$0xff] }
 0x3f7   :  { %v1042_v33 = vpop.f32.mrf.mxu0  ;;  %v1083_v19 = vpop.f32.mrf.mxu1 }
 0x3f8   :  { %v1090_v15 = vadd.f32 %v1042_v33, %v2531_v18  ;;  %v1092_v26 = vadd.f32 %v1083_v19, %v2533_v17 }
 0x3f9   :  { %v1044_v30 = vpop.f32.mrf.mxu0  ;;  %v1085_v16 = vpop.f32.mrf.mxu1 }
 0x3fa   :  { %v1094_v22 = vmul.f32 0.5, %v1090_v15  ;;  %v1091_v24 = vadd.f32 %v1044_v30, %v2532_v23  ;;  %v1093_v36 = vadd.f32 %v1085_v16, %v2534_v35  ;;  %v2538_v23 = vld [vmem:[#allocation22_spill] sm:$0xff] }
 0x3fb   :  { %v1046_v0 = vpop.f32.mrf.mxu0  ;;  %v1087_v32 = vpop.f32.mrf.mxu1 }
 0x3fc   :  { %1786 = vtanh.f32 %v1094_v22  ;;  %v1098_v28 = vmul.f32 0.5, %v1091_v24  ;;  %v1103_v3 = vmul.f32 0.5, %v1093_v36 }
 0x3fd   :  { %v1047_v44 = vpop.f32.mrf.mxu0  ;;  %v1088_v56 = vpop.f32.mrf.mxu1 }
 0x3fe   :  { %1788 = vtanh.f32 %v1098_v28 }
 0x3ff   :  { %1790 = vtanh.f32 %v1092_v26 }
 0x400   :  { %1792 = vtanh.f32 %v1103_v3 }
 0x409   :  { %v1787_v20 = vpop.eup %1786 }
 0x40a   :  { %v1096_v21 = vmul.f32 0.5, %v1787_v20 }
 0x40b   :  { %v1789_v7 = vpop.eup %1788 }
 0x40c   :  { %v1097_v27 = vadd.f32 0.5, %v1096_v21  ;;  %v1100_v34 = vmul.f32 0.5, %v1789_v7  ;;  %v1791_v48 = vpop.eup %1790 }
 0x40d   :  { %v1793_v37 = vpop.eup %1792 }
 0x40e   :  { %v1101_v45 = vadd.f32 0.5, %v1100_v34  ;;  %v1108_v25 = vmul.f32 %v1791_v48, %v1097_v27  ;;  %v1105_v4 = vmul.f32 0.5, %v1793_v37  ;;  %v2415_v37 = vld [vmem:[#allocation10 + $0xcc] ss:$16 sps:$4 sm:$0xff]  }
 0x410   :  { %v1107_v31 = vmul.f32 %v1101_v45, %v2315_v59  ;;  %v1106_v33 = vadd.f32 0.5, %v1105_v4  ;;  %v2420_v4 = vld [vmem:[#allocation10 + $0xc0] ss:$16 sps:$4 sm:$0xff]  }
 0x412   :  { %v2357_v14 = vadd.f32 %v1108_v25, %v1107_v31  ;;  %v2406_v25 = vld [vmem:[#allocation10 + $0xe0] ss:$16 sps:$4 sm:$0xff]   ;;  %v2409_v31 = vld [vmem:[#allocation10 + $0xe8] ss:$16 sps:$4 sm:$0xff]  }
 0x414   :  { %1794 = vtanh.f32 %v2357_v14 }
 0x421   :  { %v1795_v19 = vpop.eup %1794 }
 0x422   :  { %v1111_v18 = vmul.f32 %v1795_v19, %v1106_v33  ;;  %v2423_v33 = vld [vmem:[#allocation10 + $0xc8] ss:$16 sps:$4 sm:$0xff]   ;;  %v2426_v19 = vld [vmem:[#allocation10 + $0xa4] ss:$16 sps:$4 sm:$0xff]  }
 0x424   :  { %v1119_v15 = vpack.c.bf16 %v1111_v18, %v1111_v18  ;;  %v2429_v18 = vld [vmem:[#allocation10 + $0xac] ss:$16 sps:$4 sm:$0xff]  }
 0x426   :  { %1153 = vmatmul.mubr.bf16.vlgmr.msra.gmra.mxu0 %v1119_v15  ;;  %1194 = vmatmul.mubr.bf16.vlgmr.msra.gmra.mxu1 %v1119_v15  ;;  %v2432_v15 = vld [vmem:[#allocation10 + $0xa0] ss:$16 sps:$4 sm:$0xff]  }
 0x427   :  { %1233 = vmatpush1.bf16.msra.mxu0 %v2004_v38  ;;  %1274 = vmatpush1.bf16.msra.mxu1 %v2006_v39  ;;  %v2392_v38 = vld [vmem:[#allocation10 + $0xe4] ss:$16 sps:$4 sm:$0xff]   ;;  %v2395_v39 = vld [vmem:[#allocation10 + $0xec] ss:$16 sps:$4 sm:$0xff]  }
 0x428   :  { %1234 = vmatprep.subr.bf16.mxu0 %v2010_v40  ;;  %1275 = vmatprep.subr.bf16.mxu1 %v2012_v41 }
 0x429   :  { %1264 = vmatprep.mubr.bf16.mxu0 %v2530_v29  ;;  %1305 = vmatprep.mubr.bf16.mxu1 %v2530_v29 }
 0x42b   :  { %1235 = vmatpush1.bf16.msra.mxu0 %v2014_v42  ;;  %1276 = vmatpush1.bf16.msra.mxu1 %v2016_v43  ;;  %v2535_v42 = vld [vmem:[#allocation19_spill] sm:$0xff] }
 0x42c   :  { %1236 = vmatprep.subr.bf16.mxu0 %v2020_v46  ;;  %1277 = vmatprep.subr.bf16.mxu1 %v2024_v47 }
 0x42f   :  { %1237 = vmatpush1.bf16.msra.mxu0 %v2028_v49  ;;  %1278 = vmatpush1.bf16.msra.mxu1 %v2030_v50  ;;  %v2536_v50 = vld [vmem:[#allocation21_spill] sm:$0xff] }
 0x430   :  { %1238 = vmatprep.subr.bf16.mxu0 %v2034_v51  ;;  %1279 = vmatprep.subr.bf16.mxu1 %v2038_v52 }
 0x433   :  { %1239 = vmatpush1.bf16.msra.mxu0 %v2040_v53  ;;  %1280 = vmatpush1.bf16.msra.mxu1 %v2042_v54  ;;  %v2537_v54 = vld [vmem:[#allocation20_spill] sm:$0xff] }
 0x434   :  { %1240 = vmatprep.subr.bf16.mxu0 %v2048_v57  ;;  %1281 = vmatprep.subr.bf16.mxu1 %v2050_v58 }
 0x437   :  { %1241 = vmatpush1.bf16.msra.mxu0 %v2056_v60  ;;  %1282 = vmatpush1.bf16.msra.mxu1 %v2058_v61 }
 0x438   :  { %1242 = vmatprep.subr.bf16.mxu0 %v2062_v62  ;;  %1283 = vmatprep.subr.bf16.mxu1 %v2064_v63 }
 0x43b   :  { %1243 = vmatpush1.bf16.msra.mxu0 %v2066_v1  ;;  %1284 = vmatpush1.bf16.msra.mxu1 %v2070_v2 }
 0x43c   :  { %1244 = vmatprep.subr.bf16.mxu0 %v2074_v5  ;;  %1285 = vmatprep.subr.bf16.mxu1 %v2076_v6 }
 0x43f   :  { %1245 = vmatpush1.bf16.msra.mxu0 %v2082_v8  ;;  %1286 = vmatpush1.bf16.msra.mxu1 %v2084_v9 }
 0x440   :  { %1246 = vmatprep.subr.bf16.mxu0 %v2088_v10  ;;  %1287 = vmatprep.subr.bf16.mxu1 %v2090_v11 }
 0x443   :  { %1247 = vmatpush1.bf16.msra.mxu0 %v2094_v12  ;;  %1288 = vmatpush1.bf16.msra.mxu1 %v2096_v13 }
 0x444   :  { %1344 = vmatprep.subr.bf16.mxu0 %v2392_v38  ;;  %1385 = vmatprep.subr.bf16.mxu1 %v2395_v39 }
 0x4e6   :  { %v1154_v40 = vpop.f32.mrf.mxu0  ;;  %v1195_v41 = vpop.f32.mrf.mxu1 }
 0x4e7   :  { %v1202_v43 = vadd.f32 %v1154_v40, %v2535_v42  ;;  %v1204_v59 = vadd.f32 %v1195_v41, %v2537_v54  ;;  %v2435_v40 = vld [vmem:[#allocation10 + $0xa8] ss:$16 sps:$4 sm:$0xff]   ;;  %v2438_v41 = vld [vmem:[#allocation10 + $0x84] ss:$16 sps:$4 sm:$0xff]   ;;  %v2441_v42 = vld [vmem:[#allocation10 + $0x8c] ss:$16 sps:$4 sm:$0xff]  }
 0x4e8   :  { %v1156_v46 = vpop.f32.mrf.mxu0  ;;  %v1197_v47 = vpop.f32.mrf.mxu1 }
 0x4e9   :  { %v1206_v49 = vmul.f32 0.5, %v1202_v43  ;;  %v1203_v51 = vadd.f32 %v1156_v46, %v2536_v50  ;;  %v1205_v24 = vadd.f32 %v1197_v47, %v2538_v23  ;;  %v2444_v43 = vld [vmem:[#allocation10 + $0x80] ss:$16 sps:$4 sm:$0xff]   ;;  %v2447_v46 = vld [vmem:[#allocation10 + $0x88] ss:$16 sps:$4 sm:$0xff]  }
 0x4ea   :  { %v1158_v52 = vpop.f32.mrf.mxu0  ;;  %v1199_v53 = vpop.f32.mrf.mxu1 }
 0x4eb   :  { %1796 = vtanh.f32 %v1206_v49  ;;  %v1210_v30 = vmul.f32 0.5, %v1203_v51  ;;  %v1215_v0 = vmul.f32 0.5, %v1205_v24 }
 0x4ec   :  { %v1159_v16 = vpop.f32.mrf.mxu0  ;;  %v1200_v22 = vpop.f32.mrf.mxu1 }
 0x4ed   :  { %1798 = vtanh.f32 %v1210_v30 }
 0x4ee   :  { %1800 = vtanh.f32 %v1204_v59 }
 0x4ef   :  { %1802 = vtanh.f32 %v1215_v0 }
 0x4f8   :  { %v1797_v32 = vpop.eup %1796 }
 0x4f9   :  { %v1208_v17 = vmul.f32 0.5, %v1797_v32 }
 0x4fa   :  { %v1799_v26 = vpop.eup %1798 }
 0x4fb   :  { %v1209_v28 = vadd.f32 0.5, %v1208_v17  ;;  %v1212_v44 = vmul.f32 0.5, %v1799_v26  ;;  %v1801_v56 = vpop.eup %1800 }
 0x4fc   :  { %v1803_v21 = vpop.eup %1802 }
 0x4fd   :  { %v1213_v35 = vadd.f32 0.5, %v1212_v44  ;;  %v1220_v36 = vmul.f32 %v1801_v56, %v1209_v28  ;;  %v1217_v7 = vmul.f32 0.5, %v1803_v21  ;;  %v1853_v28 = vld [vmem:[#allocation10 + $0x6c] ss:$16 sps:$4 sm:$0xff]   ;;  %v1854_v44 = vld [vmem:[#allocation10 + $0x60] ss:$16 sps:$4 sm:$0xff]  }
 0x4fe   :  { %v1855_v56 = vld [vmem:[#allocation10 + $0x68] ss:$16 sps:$4 sm:$0xff]   ;;  %v1860_v21 = vld [vmem:[#allocation10 + $0x24] ss:$16 sps:$4 sm:$0xff]  }
 0x4ff   :  { %v1219_v3 = vmul.f32 %v1213_v35, %v2357_v14  ;;  %v1218_v27 = vadd.f32 0.5, %v1217_v7  ;;  %v2412_v14 = vld [vmem:[#allocation10 + $0xc4] ss:$16 sps:$4 sm:$0xff]   ;;  %v1861_v7 = vld [vmem:[#allocation10 + $0x2c] ss:$16 sps:$4 sm:$0xff]  }
 0x500   :  { %v1856_v35 = vld [vmem:[#allocation10 + $0x44] ss:$16 sps:$4 sm:$0xff]  }
 0x501   :  { %v2403_v20 = vadd.f32 %v1220_v36, %v1219_v3  ;;  %v1857_v36 = vld [vmem:[#allocation10 + $0x4c] ss:$16 sps:$4 sm:$0xff]   ;;  %v1858_v3 = vld [vmem:[#allocation10 + $0x40] ss:$16 sps:$4 sm:$0xff]  }
 0x503   :  { %1804 = vtanh.f32 %v2403_v20 }
 0x510   :  { %v1805_v34 = vpop.eup %1804 }
 0x511   :  { %v1223_v48 = vmul.f32 %v1805_v34, %v1218_v27  ;;  %v1862_v27 = vld [vmem:[#allocation10 + $0x20] ss:$16 sps:$4 sm:$0xff]   ;;  %v1863_v34 = vld [vmem:[#allocation10 + $0x28] ss:$16 sps:$4 sm:$0xff]  }
 0x513   :  { %v1231_v45 = vpack.c.bf16 %v1223_v48, %v1223_v48  ;;  %v1864_v48 = vld [vmem:[#allocation10 + $0x4] ss:$16 sps:$4 sm:$0xff]  }
 0x515   :  { %1265 = vmatmul.mubr.bf16.vlgmr.msra.gmra.mxu0 %v1231_v45  ;;  %1306 = vmatmul.mubr.bf16.vlgmr.msra.gmra.mxu1 %v1231_v45  ;;  %v1865_v45 = vld [vmem:[#allocation10 + $0xc] ss:$16 sps:$4 sm:$0xff]  }
 0x516   :  { %1345 = vmatpush1.bf16.msra.mxu0 %v2406_v25  ;;  %1386 = vmatpush1.bf16.msra.mxu1 %v2409_v31 }
 0x517   :  { %1346 = vmatprep.subr.bf16.mxu0 %v2412_v14  ;;  %1387 = vmatprep.subr.bf16.mxu1 %v2415_v37 }
 0x518   :  { %1376 = vmatprep.mubr.bf16.mxu0 %v2530_v29  ;;  %1417 = vmatprep.mubr.bf16.mxu1 %v2530_v29 }
 0x51a   :  { %1347 = vmatpush1.bf16.msra.mxu0 %v2420_v4  ;;  %1388 = vmatpush1.bf16.msra.mxu1 %v2423_v33 }
 0x51b   :  { %1348 = vmatprep.subr.bf16.mxu0 %v2426_v19  ;;  %1389 = vmatprep.subr.bf16.mxu1 %v2429_v18 }
 0x51e   :  { %1349 = vmatpush1.bf16.msra.mxu0 %v2432_v15  ;;  %1390 = vmatpush1.bf16.msra.mxu1 %v2435_v40 }
 0x51f   :  { %1350 = vmatprep.subr.bf16.mxu0 %v2438_v41  ;;  %1391 = vmatprep.subr.bf16.mxu1 %v2441_v42 }
 0x522   :  { %1351 = vmatpush1.bf16.msra.mxu0 %v2444_v43  ;;  %1392 = vmatpush1.bf16.msra.mxu1 %v2447_v46 }
 0x523   :  { %1352 = vmatprep.subr.bf16.mxu0 %v2048_v57  ;;  %1393 = vmatprep.subr.bf16.mxu1 %v2050_v58 }
 0x526   :  { %1353 = vmatpush1.bf16.msra.mxu0 %v2056_v60  ;;  %1394 = vmatpush1.bf16.msra.mxu1 %v2058_v61  ;;  %v2539_v60 = vld [vmem:[#allocation23_spill] sm:$0xff] }
 0x527   :  { %1354 = vmatprep.subr.bf16.mxu0 %v2062_v62  ;;  %1395 = vmatprep.subr.bf16.mxu1 %v2064_v63 }
 0x52a   :  { %1355 = vmatpush1.bf16.msra.mxu0 %v2066_v1  ;;  %1396 = vmatpush1.bf16.msra.mxu1 %v2070_v2  ;;  %v2540_v2 = vld [vmem:[#allocation25_spill] sm:$0xff] }
 0x52b   :  { %1356 = vmatprep.subr.bf16.mxu0 %v2074_v5  ;;  %1397 = vmatprep.subr.bf16.mxu1 %v2076_v6 }
 0x52e   :  { %1357 = vmatpush1.bf16.msra.mxu0 %v2082_v8  ;;  %1398 = vmatpush1.bf16.msra.mxu1 %v2084_v9  ;;  %v2541_v9 = vld [vmem:[#allocation24_spill] sm:$0xff] }
 0x52f   :  { %1358 = vmatprep.subr.bf16.mxu0 %v2088_v10  ;;  %1399 = vmatprep.subr.bf16.mxu1 %v2090_v11 }
 0x532   :  { %1359 = vmatpush1.bf16.msra.mxu0 %v2094_v12  ;;  %1400 = vmatpush1.bf16.msra.mxu1 %v2096_v13 }
 0x533   :  { %1456 = vmatprep.subr.bf16.mxu0 %v2392_v38  ;;  %1497 = vmatprep.subr.bf16.mxu1 %v2395_v39  ;;  %v2542_v38 = vld [vmem:[#allocation26_spill] sm:$0xff] }
 0x5d5   :  { %v1266_v57 = vpop.f32.mrf.mxu0  ;;  %v1307_v58 = vpop.f32.mrf.mxu1 }
 0x5d6   :  { %v1314_v61 = vadd.f32 %v1266_v57, %v2539_v60  ;;  %v1316_v10 = vadd.f32 %v1307_v58, %v2541_v9 }
 0x5d7   :  { %v1268_v62 = vpop.f32.mrf.mxu0  ;;  %v1309_v63 = vpop.f32.mrf.mxu1 }
 0x5d8   :  { %v1318_v1 = vmul.f32 0.5, %v1314_v61  ;;  %v1315_v5 = vadd.f32 %v1268_v62, %v2540_v2  ;;  %v1317_v39 = vadd.f32 %v1309_v63, %v2542_v38  ;;  %v2546_v62 = vld [vmem:[#allocation30_spill] sm:$0xff] }
 0x5d9   :  { %v1270_v6 = vpop.f32.mrf.mxu0  ;;  %v1311_v8 = vpop.f32.mrf.mxu1 }
 0x5da   :  { %1806 = vtanh.f32 %v1318_v1  ;;  %v1322_v11 = vmul.f32 0.5, %v1315_v5  ;;  %v1327_v47 = vmul.f32 0.5, %v1317_v39 }
 0x5db   :  { %v1271_v12 = vpop.f32.mrf.mxu0  ;;  %v1312_v13 = vpop.f32.mrf.mxu1 }
 0x5dc   :  { %1808 = vtanh.f32 %v1322_v11 }
 0x5dd   :  { %1810 = vtanh.f32 %v1316_v10 }
 0x5de   :  { %1812 = vtanh.f32 %v1327_v47 }
 0x5e7   :  { %v1807_v49 = vpop.eup %1806 }
 0x5e8   :  { %v1320_v50 = vmul.f32 0.5, %v1807_v49 }
 0x5e9   :  { %v1809_v51 = vpop.eup %1808 }
 0x5ea   :  { %v1321_v52 = vadd.f32 0.5, %v1320_v50  ;;  %v1324_v53 = vmul.f32 0.5, %v1809_v51  ;;  %v1811_v54 = vpop.eup %1810 }
 0x5eb   :  { %v1813_v23 = vpop.eup %1812 }
 0x5ec   :  { %v1325_v59 = vadd.f32 0.5, %v1324_v53  ;;  %v1332_v30 = vmul.f32 %v1811_v54, %v1321_v52  ;;  %v1329_v24 = vmul.f32 0.5, %v1813_v23 }
 0x5ee   :  { %v1331_v16 = vmul.f32 %v1325_v59, %v2403_v20  ;;  %v1330_v0 = vadd.f32 0.5, %v1329_v24  ;;  %v1859_v20 = vld [vmem:[#allocation10 + $0x48] ss:$16 sps:$4 sm:$0xff]  }
 0x5ef   :  { %v2547_v59 = vld [vmem:[#allocation31_spill] sm:$0xff] }
 0x5f0   :  { %v2473_v22 = vadd.f32 %v1332_v30, %v1331_v16 }
 0x5f2   :  { %1814 = vtanh.f32 %v2473_v22 }
 0x5ff   :  { %v1815_v32 = vpop.eup %1814 }
 0x600   :  { %v1335_v17 = vmul.f32 %v1815_v32, %v1330_v0 }
 0x602   :  { %v1343_v26 = vpack.c.bf16 %v1335_v17, %v1335_v17  ;;  %v2548_v17 = vld [vmem:[#allocation32_spill] sm:$0xff] }
 0x604   :  { %1377 = vmatmul.mubr.bf16.vlgmr.msra.gmra.mxu0 %v1343_v26  ;;  %1418 = vmatmul.mubr.bf16.vlgmr.msra.gmra.mxu1 %v1343_v26 }
 0x605   :  { %1457 = vmatpush1.bf16.msra.mxu0 %v2406_v25  ;;  %1498 = vmatpush1.bf16.msra.mxu1 %v2409_v31  ;;  %v1866_v25 = vld [vmem:[#allocation10] ss:$16 sps:$4 sm:$0xff]   ;;  %v1867_v31 = vld [vmem:[#allocation10 + $0x8] ss:$16 sps:$4 sm:$0xff]  }
 0x606   :  { %1458 = vmatprep.subr.bf16.mxu0 %v2412_v14  ;;  %1499 = vmatprep.subr.bf16.mxu1 %v2415_v37 }
 0x607   :  { %1488 = vmatprep.mubr.bf16.mxu0 %v2530_v29  ;;  %1529 = vmatprep.mubr.bf16.mxu1 %v2530_v29  ;;  %v1852_v29 = vld [vmem:[#allocation10 + $0x64] ss:$16 sps:$4 sm:$0xff]  }
 0x609   :  { %1459 = vmatpush1.bf16.msra.mxu0 %v2420_v4  ;;  %1500 = vmatpush1.bf16.msra.mxu1 %v2423_v33  ;;  %v2543_v4 = vld [vmem:[#allocation27_spill] sm:$0xff] }
 0x60a   :  { %1460 = vmatprep.subr.bf16.mxu0 %v2426_v19  ;;  %1501 = vmatprep.subr.bf16.mxu1 %v2429_v18 }
 0x60d   :  { %1461 = vmatpush1.bf16.msra.mxu0 %v2432_v15  ;;  %1502 = vmatpush1.bf16.msra.mxu1 %v2435_v40  ;;  %v2544_v40 = vld [vmem:[#allocation29_spill] sm:$0xff] }
 0x60e   :  { %1462 = vmatprep.subr.bf16.mxu0 %v2438_v41  ;;  %1503 = vmatprep.subr.bf16.mxu1 %v2441_v42 }
 0x611   :  { %1463 = vmatpush1.bf16.msra.mxu0 %v2444_v43  ;;  %1504 = vmatpush1.bf16.msra.mxu1 %v2447_v46  ;;  %v2545_v46 = vld [vmem:[#allocation28_spill] sm:$0xff] }
 0x612   :  { %1464 = vmatprep.subr.bf16.mxu0 %v1852_v29  ;;  %1505 = vmatprep.subr.bf16.mxu1 %v1853_v28 }
 0x615   :  { %1465 = vmatpush1.bf16.msra.mxu0 %v1854_v44  ;;  %1506 = vmatpush1.bf16.msra.mxu1 %v1855_v56  ;;  %v2549_v56 = vld [vmem:[#allocation33_spill] sm:$0xff] }
 0x616   :  { %1466 = vmatprep.subr.bf16.mxu0 %v1856_v35  ;;  %1507 = vmatprep.subr.bf16.mxu1 %v1857_v36 }
 0x619   :  { %1467 = vmatpush1.bf16.msra.mxu0 %v1858_v3  ;;  %1508 = vmatpush1.bf16.msra.mxu1 %v1859_v20 }
 0x61a   :  { %1468 = vmatprep.subr.bf16.mxu0 %v1860_v21  ;;  %1509 = vmatprep.subr.bf16.mxu1 %v1861_v7 }
 0x61d   :  { %1469 = vmatpush1.bf16.msra.mxu0 %v1862_v27  ;;  %1510 = vmatpush1.bf16.msra.mxu1 %v1863_v34 }
 0x61e   :  { %1470 = vmatprep.subr.bf16.mxu0 %v1864_v48  ;;  %1511 = vmatprep.subr.bf16.mxu1 %v1865_v45 }
 0x621   :  { %1471 = vmatpush1.bf16.msra.mxu0 %v1866_v25  ;;  %1512 = vmatpush1.bf16.msra.mxu1 %v1867_v31 }
 0x6c4   :  { %v1378_v14 = vpop.f32.mrf.mxu0  ;;  %v1419_v37 = vpop.f32.mrf.mxu1 }
 0x6c5   :  { %v1426_v33 = vadd.f32 %v1378_v14, %v2543_v4  ;;  %v1428_v57 = vadd.f32 %v1419_v37, %v2545_v46 }
 0x6c6   :  { %v1380_v19 = vpop.f32.mrf.mxu0  ;;  %v1421_v18 = vpop.f32.mrf.mxu1 }
 0x6c7   :  { %v1430_v15 = vmul.f32 0.5, %v1426_v33  ;;  %v1427_v41 = vadd.f32 %v1380_v19, %v2544_v40  ;;  %v1429_v63 = vadd.f32 %v1421_v18, %v2546_v62 }
 0x6c8   :  { %v1382_v42 = vpop.f32.mrf.mxu0  ;;  %v1423_v43 = vpop.f32.mrf.mxu1 }
 0x6c9   :  { %1816 = vtanh.f32 %v1430_v15  ;;  %v1434_v58 = vmul.f32 0.5, %v1427_v41  ;;  %v1439_v1 = vmul.f32 0.5, %v1429_v63 }
 0x6ca   :  { %v1383_v60 = vpop.f32.mrf.mxu0  ;;  %v1424_v61 = vpop.f32.mrf.mxu1 }
 0x6cb   :  { %1818 = vtanh.f32 %v1434_v58 }
 0x6cc   :  { %1820 = vtanh.f32 %v1428_v57 }
 0x6cd   :  { %1822 = vtanh.f32 %v1439_v1 }
 0x6d6   :  { %v1817_v2 = vpop.eup %1816 }
 0x6d7   :  { %v1432_v5 = vmul.f32 0.5, %v1817_v2 }
 0x6d8   :  { %v1819_v6 = vpop.eup %1818 }
 0x6d9   :  { %v1433_v8 = vadd.f32 0.5, %v1432_v5  ;;  %v1436_v9 = vmul.f32 0.5, %v1819_v6  ;;  %v1821_v10 = vpop.eup %1820 }
 0x6da   :  { %v1823_v39 = vpop.eup %1822 }
 0x6db   :  { %v1437_v11 = vadd.f32 0.5, %v1436_v9  ;;  %v1444_v12 = vmul.f32 %v1821_v10, %v1433_v8  ;;  %v1441_v47 = vmul.f32 0.5, %v1823_v39 }
 0x6dd   :  { %v1443_v13 = vmul.f32 %v1437_v11, %v2473_v22  ;;  %v1442_v49 = vadd.f32 0.5, %v1441_v47 }
 0x6df   :  { %v1445_v38 = vadd.f32 %v1444_v12, %v1443_v13 }
 0x6e1   :  { %1824 = vtanh.f32 %v1445_v38 }
 0x6ee   :  { %v1825_v50 = vpop.eup %1824 }
 0x6ef   :  { %v1447_v51 = vmul.f32 %v1825_v50, %v1442_v49 }
 0x6f1   :  { %v1455_v52 = vpack.c.bf16 %v1447_v51, %v1447_v51 }
 0x6f3   :  { %1489 = vmatmul.mubr.bf16.vlgmr.msra.gmra.mxu0 %v1455_v52  ;;  %1530 = vmatmul.mubr.bf16.vlgmr.msra.gmra.mxu1 %v1455_v52 }
 0x7b3   :  { %v1490_v53 = vpop.f32.mrf.mxu0  ;;  %v1531_v54 = vpop.f32.mrf.mxu1 }
 0x7b4   :  { %v1538_v30 = vadd.f32 %v1490_v53, %v2547_v59  ;;  %v1540_v26 = vadd.f32 %v1531_v54, %v2548_v17 }
 0x7b5   :  { %v1492_v16 = vpop.f32.mrf.mxu0  ;;  %v1533_v23 = vpop.f32.mrf.mxu1 }
 0x7b6   :  { %v1542_v24 = vmul.f32 0.5, %v1538_v30  ;;  %v1539_v0 = vadd.f32 %v1492_v16, %v2221_v55  ;;  %v1541_v35 = vadd.f32 %v1533_v23, %v2549_v56 }
 0x7b7   :  { %v1494_v22 = vpop.f32.mrf.mxu0  ;;  %v1535_v32 = vpop.f32.mrf.mxu1 }
 0x7b8   :  { %1826 = vtanh.f32 %v1542_v24  ;;  %v1546_v29 = vmul.f32 0.5, %v1539_v0  ;;  %v1551_v36 = vmul.f32 0.5, %v1541_v35 }
 0x7b9   :  { %v1495_v28 = vpop.f32.mrf.mxu0  ;;  %v1536_v44 = vpop.f32.mrf.mxu1 }
 0x7ba   :  { %1828 = vtanh.f32 %v1546_v29 }
 0x7bb   :  { %1830 = vtanh.f32 %v1540_v26 }
 0x7bc   :  { %1832 = vtanh.f32 %v1551_v36 }
 0x7c5   :  { %v1827_v3 = vpop.eup %1826 }
 0x7c6   :  { %v1544_v20 = vmul.f32 0.5, %v1827_v3 }
 0x7c7   :  { %v1829_v21 = vpop.eup %1828 }
 0x7c8   :  { %v1545_v7 = vadd.f32 0.5, %v1544_v20  ;;  %v1548_v27 = vmul.f32 0.5, %v1829_v21  ;;  %v1831_v55 = vpop.eup %1830 }
 0x7c9   :  { %v1833_v31 = vpop.eup %1832 }
 0x7ca   :  { %v1549_v34 = vadd.f32 0.5, %v1548_v27  ;;  %v1556_v48 = vmul.f32 %v1831_v55, %v1545_v7  ;;  %v1553_v14 = vmul.f32 0.5, %v1833_v31 }
 0x7cc   :  { %v1555_v45 = vmul.f32 %v1549_v34, %v1445_v38  ;;  %v1554_v37 = vadd.f32 0.5, %v1553_v14 }
 0x7ce   :  { %v1557_v25 = vadd.f32 %v1556_v48, %v1555_v45 }
 0x7d0   :  { %1834 = vtanh.f32 %v1557_v25 }
 0x7dd   :  { %v1835_v4 = vpop.eup %1834 }
 0x7de   :  { %v1559_v33 = vmul.f32 %v1835_v4, %v1554_v37 }
 0x7e0   :  { %1562 = vst [vmem:[#allocation11] sm:$0xff] %v1559_v33 }
 0x7e1   :  { %1939 = shalt.err (!%p1936_p5)
}
 0x7e2   :  { %1572 = dma.vmem_to_hbm [thread:$0]  %s1570_s7, 128, %s2508_s4, [#allocation7]  }
 0x7e3   :  { %1952 = dma.done.wait [#allocation7], 128  }
 0x7e4   :  { %1953 = vsyncadd [#allocation7], 4294967168 }
 0x7e5   :  { %1576 = vsyncpa [#allocation6], 1 }
 0x7e6   :  { %1577 = vsyncpa [#allocation9], 1 }
 0x7e7   :  { %1578 = vsyncpa [#allocation7], 1 }

</bundles_post_ra>
